<compile_context>
chip_gen: v5e
topology: v5e:2x2
jax: 0.10.0
libtpu: 0.0.40
codegen_flags: <defaults>
</compile_context>

<pallas_src>
import functools

import jax
import jax.numpy as jnp
from jax.experimental import pallas as pl
from jax.experimental.pallas import tpu as pltpu

Q = 3
KERNEL_SIZE = 4
STRIDE = 1
PADDING = 1


def _round_up(x, m):
    return ((x + m - 1) // m) * m


def _pick_tile_m(m, per_row_bytes):
    """Largest M tile (mult of 8) with even block count, bounded waste, VMEM budget."""
    budget = 8 * 1024 * 1024
    cands = (1024, 896, 768, 640, 512, 384, 256, 192, 128, 96, 64, 32, 16, 8)
    best_any = None
    for tm in cands:
        if tm * per_row_bytes > budget:
            continue
        num = -(-m // tm)
        if num < 2:
            continue
        if best_any is None:
            best_any = tm
        waste = num * tm - m
        if num % 2 == 0 and waste * 8 <= m:      # even blocks for 2 TCs, <=12.5% waste
            return tm
    return best_any if best_any is not None else 8


# ----------------------------------------------------------------------------
# Pallas kernel: SelfONN2d (stride=1) as kH dots of K = kW*q*Cin, fused bias+tanh
# ----------------------------------------------------------------------------
def _selfonn_matmul_kernel(x_hbm, w_ref, b_ref, o_ref, win_ref, sem,
                           *, tm, wp_flat, kh, apply_tanh):
    """One (TM, Npad) output block per grid step.

    x_hbm  : (rows, kW*q*Cin) bf16 flat dx/power-fused activations, left in HBM
    w_ref  : (kH, kW*q*Cin, Npad) bf16 weights, fully VMEM-resident
    b_ref  : (1, Npad) f32 bias
    o_ref  : (TM, Npad) bf16 output block
    win_ref: (TM + (kH-1)*Wp_flat, kW*q*Cin) bf16 activation window scratch
    sem    : DMA semaphore
    """
    i = pl.program_id(0)
    win_rows = tm + (kh - 1) * wp_flat
    start = pl.multiple_of(i * tm, 8)

    # One small DMA per M block; the same descriptor is started and waited on.
    # TODO(synk): cross-M-block prefetch would hide this latency but is not
    # megacore-safe with a "parallel" M axis, so it is left synchronous.
    cp = pltpu.make_async_copy(x_hbm.at[pl.ds(start, win_rows), :], win_ref, sem)
    cp.start()
    cp.wait()

    acc = None
    for dy in range(kh):                         # static, fully unrolled
        lhs = win_ref[pl.ds(dy * wp_flat, tm), :]          # sublane-aligned slice
        part = jnp.dot(lhs, w_ref[dy], preferred_element_type=jnp.float32)
        acc = part if acc is None else acc + part          # no explicit zero-init

    r = acc + b_ref[...]                         # f32 epilogue
    if apply_tanh:
        r = jnp.tanh(r)
    o_ref[...] = r.astype(o_ref.dtype)           # bf16, lane-dense (Npad % 128 == 0)


def selfonn_conv2d(x_nhwc, packed, *, apply_tanh=True):
    """SelfONN2d (stride=1) + tanh, NHWC bf16 in -> NHWC bf16 out."""
    k, q, cin, cout, pad = (packed["k"], packed["q"], packed["cin"],
                            packed["cout"], packed["padding"])
    w_packed, b_packed = packed["w"], packed["b"]
    n, h, w, c = x_nhwc.shape
    assert c == cin

    hp, wpt = h + 2 * pad, w + 2 * pad           # zero-padded spatial dims
    ho, wo = hp - k + 1, wpt - k + 1             # stride = 1 output dims
    wp_flat = _round_up(wpt, 8)                  # row stride: dy*wp_flat is 8-aligned

    # --- host-side K-fusion (powers + dx taps), all lane-dense, bf16 storage ---
    x_zp = jnp.pad(x_nhwc, ((0, 0), (pad, pad), (pad, pad), (0, 0)))
    xf = x_zp.astype(jnp.float32)                # powers computed once, in f32
    pw_list = [xf]
    for _ in range(q - 1):
        pw_list.append(pw_list[-1] * xf)
    pw = jnp.concatenate(pw_list, axis=-1).astype(jnp.bfloat16)   # (n,hp,wpt,q*cin)
    pw = jnp.pad(pw, ((0, 0), (0, 0), (0, k - 1), (0, 0)))        # room for dx shifts
    fused = jnp.concatenate([pw[:, :, dx:dx + wpt, :] for dx in range(k)],
                            axis=-1)             # (n,hp,wpt,k*q*cin), (dx,p,cin) order
    fused = jnp.pad(fused, ((0, 0), (0, 0), (0, wp_flat - wpt), (0, 0)))

    kq = k * q * cin                             # MXU K per dy (=96 for cin=8,q=3,k=4)
    npad = w_packed.shape[-1]
    m = n * hp * wp_flat
    per_row_bytes = 2 * kq + 12 * npad           # window + dbl-buffered out + f32 acc
    tm = _pick_tile_m(m, per_row_bytes)
    mp = _round_up(m, tm)
    rows_total = mp + (k - 1) * wp_flat          # last block's window stays in bounds
    x_flat = jnp.pad(fused.reshape(m, kq), ((0, rows_total - m), (0, 0)))
    num_m = mp // tm

    kernel = functools.partial(_selfonn_matmul_kernel, tm=tm, wp_flat=wp_flat,
                               kh=k, apply_tanh=apply_tanh)
    out = pl.pallas_call(
        kernel,
        out_shape=jax.ShapeDtypeStruct((mp, npad), jnp.bfloat16),
        grid_spec=pltpu.PrefetchScalarGridSpec(
            num_scalar_prefetch=0,
            grid=(num_m,),
            in_specs=[
                pl.BlockSpec(memory_space=pl.ANY),                 # activations (HBM)
                pl.BlockSpec((k, kq, npad), lambda i: (0, 0, 0)),  # resident weights
                pl.BlockSpec((1, npad), lambda i: (0, 0)),         # resident bias
            ],
            out_specs=pl.BlockSpec((tm, npad), lambda i: (i, 0)),
            scratch_shapes=[
                pltpu.VMEM((tm + (k - 1) * wp_flat, kq), jnp.bfloat16),
                pltpu.SemaphoreType.DMA(()),
            ],
        ),
        compiler_params=pltpu.CompilerParams(dimension_semantics=("parallel",)),
    )(x_flat, w_packed, b_packed)

    return out[:m, :cout].reshape(n, hp, wp_flat, cout)[:, :ho, :wo, :]


# ----------------------------------------------------------------------------
# One-time parameter packing (transpose / pad / bf16 cast outside the forward)
# ----------------------------------------------------------------------------
def pack_selfonn_params(weight, bias, in_channels, q, kernel_size, padding):
    """(Cout, q*Cin, kH, kW) f32 torch layout -> (kH, kW*q*Cin, Npad) bf16."""
    cout, qcin, kh, kw = weight.shape
    assert qcin == q * in_channels and kh == kw == kernel_size
    npad = _round_up(max(cout, 128), 128)
    # TODO(synk): assumes the torch SelfONN q*Cin axis is q-major (x**1..x**q blocks).
    w5 = weight.reshape(cout, q, in_channels, kh, kw)
    w6 = jnp.transpose(w5, (3, 4, 1, 2, 0)).reshape(kh, kw * q * in_channels, cout)
    w_packed = (jnp.zeros((kh, kw * q * in_channels, npad), jnp.bfloat16)
                .at[..., :cout].set(w6.astype(jnp.bfloat16)))
    b_packed = jnp.zeros((1, npad), jnp.float32).at[0, :cout].set(bias.astype(jnp.float32))
    return {"w": w_packed, "b": b_packed, "cin": in_channels, "cout": cout,
            "k": kernel_size, "q": q, "padding": padding}


def init_upsample_params(key, in_channels, out_channels,
                         kernel_size=KERNEL_SIZE, padding=PADDING, q=Q):
    kw_, kb_ = jax.random.split(key)
    fan_in = in_channels * q * kernel_size * kernel_size
    scale = 1.0 / float(fan_in) ** 0.5
    w = jax.random.uniform(kw_, (out_channels, q * in_channels, kernel_size, kernel_size),
                           jnp.float32, -scale, scale)
    b = jax.random.uniform(kb_, (out_channels,), jnp.float32, -scale, scale)
    return pack_selfonn_params(w, b, in_channels, q, kernel_size, padding)


# ----------------------------------------------------------------------------
# Data-movement glue: bilinear x2 (align_corners=False) and ReflectionPad2d(1)
# ----------------------------------------------------------------------------
def bilinear_upsample_x2(x):
    """nn.Upsample(scale_factor=2, mode='bilinear', align_corners=False), NHWC.
    Fixed 0.25/0.75 weights via slice-adds; no gathers."""
    def up_h(v):
        prev = jnp.concatenate([v[:, :1], v[:, :-1]], axis=1)   # clamped i-1
        nxt = jnp.concatenate([v[:, 1:], v[:, -1:]], axis=1)    # clamped i+1
        even = 0.75 * v + 0.25 * prev
        odd = 0.75 * v + 0.25 * nxt
        return jnp.stack([even, odd], axis=2).reshape(
            v.shape[0], 2 * v.shape[1], v.shape[2], v.shape[3])

    def up_w(v):
        prev = jnp.concatenate([v[:, :, :1], v[:, :, :-1]], axis=2)
        nxt = jnp.concatenate([v[:, :, 1:], v[:, :, -1:]], axis=2)
        even = 0.75 * v + 0.25 * prev
        odd = 0.75 * v + 0.25 * nxt
        return jnp.stack([even, odd], axis=3).reshape(
            v.shape[0], v.shape[1], 2 * v.shape[2], v.shape[3])

    return up_w(up_h(x))


def reflection_pad_1(x_nhwc):
    return jnp.pad(x_nhwc, ((0, 0), (1, 1), (1, 1), (0, 0)), mode="reflect")


# ----------------------------------------------------------------------------
# Forward pass of the `Upsample` module (inference)
# ----------------------------------------------------------------------------
def upsample_block_forward(params, x_nchw, shortcut_nchw=None):
    x = jnp.transpose(x_nchw, (0, 2, 3, 1)).astype(jnp.bfloat16)  # NCHW->NHWC, bf16 early
    x = bilinear_upsample_x2(x)
    x = reflection_pad_1(x)
    y = selfonn_conv2d(x, params, apply_tanh=True).astype(jnp.float32)
    # TODO(synk): nn.Dropout2d(0.5) is the identity in eval/inference mode; not applied.
    if shortcut_nchw is not None:
        s = jnp.transpose(shortcut_nchw, (0, 2, 3, 1)).astype(jnp.float32)
        y = jnp.concatenate([y, s], axis=-1)                      # torch.cat([x, skip], 1)
    return jnp.transpose(y, (0, 3, 1, 2))                         # NHWC -> NCHW


if __name__ == "__main__":
    key = jax.random.PRNGKey(0)
    kp, kx, ks = jax.random.split(key, 3)
    in_channels, out_channels = 8, 16
    params = init_upsample_params(kp, in_channels, out_channels)

    # batch=2, 8 channels, 16x16 spatial: 16 -> x2 -> 32 -> reflpad -> 34
    # -> conv(k=4, pad=1, stride=1) -> 33
    x = jax.random.normal(kx, (2, in_channels, 16, 16), jnp.float32)

    fwd = jax.jit(lambda xx: upsample_block_forward(params, xx))
    out = jax.block_until_ready(fwd(x))
    assert out.shape == (2, out_channels, 33, 33), out.shape
    assert bool(jnp.all(jnp.isfinite(out)))
    assert bool(jnp.max(jnp.abs(out)) <= 1.0)     # tanh range

    # shortcut path (torch.cat([x, shortcut], dim=1))
    skip = jax.random.normal(ks, (2, in_channels, 33, 33), jnp.float32)
    fwd_skip = jax.jit(lambda xx, sk: upsample_block_forward(params, xx, sk))
    out2 = jax.block_until_ready(fwd_skip(x, skip))
    assert out2.shape == (2, out_channels + in_channels, 33, 33), out2.shape
    assert bool(jnp.all(jnp.isfinite(out2)))

    print("KERNEL_OK")
</pallas_src>

<mosaic_0001>
module attributes {stable_mosaic.version = 11 : i64} {
  func.func @_selfonn_matmul_kernel(%arg0: i32, %arg1: memref<3192x96xbf16, #tpu.memory_space<any>>, %arg2: memref<4x96x128xbf16, #tpu.memory_space<vmem>>, %arg3: memref<1x128xf32, #tpu.memory_space<vmem>>, %arg4: memref<768x128xbf16, #tpu.memory_space<vmem>>, %arg5: memref<888x96xbf16, #tpu.memory_space<vmem>>, %arg6: memref<!tpu.dma_semaphore, #tpu.memory_space<semaphore_mem>>) attributes {dimension_semantics = [#tpu.dimension_semantics<parallel>], iteration_bounds = array<i64: 4>, scalar_prefetch = 0 : i64, scratch_operands = 2 : i64, tpu.core_type = #tpu.core_type<tc>, window_params = [{}, {pipeline_mode = #tpu.pipeline_mode<synchronous>, transform_indices = @transform_1, window_bounds = array<i64: 4, 96, 128>}, {pipeline_mode = #tpu.pipeline_mode<synchronous>, transform_indices = @transform_2, window_bounds = array<i64: 1, 128>}, {transform_indices = @transform_3, window_bounds = array<i64: 768, 128>}]} {
    %c768_i32 = arith.constant 768 : i32
    %0 = arith.muli %arg0, %c768_i32 : i32
    %1 = tpu.assume_multiple %0, 8 : i32
    %c0_i32 = arith.constant 0 : i32
    %2 = tpu.memref_slice %arg1[%1, %c0_i32] : memref<3192x96xbf16, #tpu.memory_space<any>> -> memref<888x96xbf16, #tpu.memory_space<any>>
    tpu.enqueue_dma source(%2 : memref<888x96xbf16, #tpu.memory_space<any>>) target(%arg5 : memref<888x96xbf16, #tpu.memory_space<vmem>>) target_semaphore(%arg6 : memref<!tpu.dma_semaphore, #tpu.memory_space<semaphore_mem>>)
    %c0_i32_0 = arith.constant 0 : i32
    %3 = tpu.memref_slice %arg1[%1, %c0_i32_0] : memref<3192x96xbf16, #tpu.memory_space<any>> -> memref<888x96xbf16, #tpu.memory_space<any>>
    tpu.wait_dma2 semaphore(%arg6 : memref<!tpu.dma_semaphore, #tpu.memory_space<semaphore_mem>>) src(%3 : memref<888x96xbf16, #tpu.memory_space<any>>) dst(%arg5 : memref<888x96xbf16, #tpu.memory_space<vmem>>)
    %c0 = arith.constant 0 : index
    %c0_1 = arith.constant 0 : index
    %4 = vector.load %arg5[%c0, %c0_1] : memref<888x96xbf16, #tpu.memory_space<vmem>>, vector<768x96xbf16>
    %c0_2 = arith.constant 0 : index
    %c0_3 = arith.constant 0 : index
    %c0_4 = arith.constant 0 : index
    %5 = vector.load %arg2[%c0_2, %c0_3, %c0_4] : memref<4x96x128xbf16, #tpu.memory_space<vmem>>, vector<1x96x128xbf16>
    %6 = vector.shape_cast %5 : vector<1x96x128xbf16> to vector<96x128xbf16>
    %cst = arith.constant dense<0.000000e+00> : vector<768x128xf32>
    %7 = tpu.matmul %4, %6, %cst {dimension_numbers = #tpu.dot_dimension_numbers<[1], [0], [0], [1], [0, 0, 1, 1], [], []>} : vector<768x96xbf16>, vector<96x128xbf16>, vector<768x128xf32> -> vector<768x128xf32>
    %c40 = arith.constant 40 : index
    %c0_5 = arith.constant 0 : index
    %8 = vector.load %arg5[%c40, %c0_5] : memref<888x96xbf16, #tpu.memory_space<vmem>>, vector<768x96xbf16>
    %c1 = arith.constant 1 : index
    %c0_6 = arith.constant 0 : index
    %c0_7 = arith.constant 0 : index
    %9 = vector.load %arg2[%c1, %c0_6, %c0_7] : memref<4x96x128xbf16, #tpu.memory_space<vmem>>, vector<1x96x128xbf16>
    %10 = vector.shape_cast %9 : vector<1x96x128xbf16> to vector<96x128xbf16>
    %cst_8 = arith.constant dense<0.000000e+00> : vector<768x128xf32>
    %11 = tpu.matmul %8, %10, %cst_8 {dimension_numbers = #tpu.dot_dimension_numbers<[1], [0], [0], [1], [0, 0, 1, 1], [], []>} : vector<768x96xbf16>, vector<96x128xbf16>, vector<768x128xf32> -> vector<768x128xf32>
    %12 = arith.addf %7, %11 : vector<768x128xf32>
    %c80 = arith.constant 80 : index
    %c0_9 = arith.constant 0 : index
    %13 = vector.load %arg5[%c80, %c0_9] : memref<888x96xbf16, #tpu.memory_space<vmem>>, vector<768x96xbf16>
    %c2 = arith.constant 2 : index
    %c0_10 = arith.constant 0 : index
    %c0_11 = arith.constant 0 : index
    %14 = vector.load %arg2[%c2, %c0_10, %c0_11] : memref<4x96x128xbf16, #tpu.memory_space<vmem>>, vector<1x96x128xbf16>
    %15 = vector.shape_cast %14 : vector<1x96x128xbf16> to vector<96x128xbf16>
    %cst_12 = arith.constant dense<0.000000e+00> : vector<768x128xf32>
    %16 = tpu.matmul %13, %15, %cst_12 {dimension_numbers = #tpu.dot_dimension_numbers<[1], [0], [0], [1], [0, 0, 1, 1], [], []>} : vector<768x96xbf16>, vector<96x128xbf16>, vector<768x128xf32> -> vector<768x128xf32>
    %17 = arith.addf %12, %16 : vector<768x128xf32>
    %c120 = arith.constant 120 : index
    %c0_13 = arith.constant 0 : index
    %18 = vector.load %arg5[%c120, %c0_13] : memref<888x96xbf16, #tpu.memory_space<vmem>>, vector<768x96xbf16>
    %c3 = arith.constant 3 : index
    %c0_14 = arith.constant 0 : index
    %c0_15 = arith.constant 0 : index
    %19 = vector.load %arg2[%c3, %c0_14, %c0_15] : memref<4x96x128xbf16, #tpu.memory_space<vmem>>, vector<1x96x128xbf16>
    %20 = vector.shape_cast %19 : vector<1x96x128xbf16> to vector<96x128xbf16>
    %cst_16 = arith.constant dense<0.000000e+00> : vector<768x128xf32>
    %21 = tpu.matmul %18, %20, %cst_16 {dimension_numbers = #tpu.dot_dimension_numbers<[1], [0], [0], [1], [0, 0, 1, 1], [], []>} : vector<768x96xbf16>, vector<96x128xbf16>, vector<768x128xf32> -> vector<768x128xf32>
    %22 = arith.addf %17, %21 : vector<768x128xf32>
    %c0_17 = arith.constant 0 : index
    %c0_18 = arith.constant 0 : index
    %23 = vector.load %arg3[%c0_17, %c0_18] : memref<1x128xf32, #tpu.memory_space<vmem>>, vector<1x128xf32>
    %24 = vector.broadcast %23 : vector<1x128xf32> to vector<768x128xf32>
    %25 = arith.addf %22, %24 : vector<768x128xf32>
    %26 = math.tanh %25 : vector<768x128xf32>
    %27 = arith.truncf %26 : vector<768x128xf32> to vector<768x128xbf16>
    %c0_19 = arith.constant 0 : index
    %c0_20 = arith.constant 0 : index
    %28 = vector.load %arg4[%c0_19, %c0_20] : memref<768x128xbf16, #tpu.memory_space<vmem>>, vector<768x128xbf16>
    tpu.vector_store %arg4[%c0_19, %c0_20], %27 {strides = array<i32>} : memref<768x128xbf16, #tpu.memory_space<vmem>>, vector<768x128xbf16>,
    return
  }
  func.func @transform_1(%arg0: i32) -> (i32, i32, i32) {
    %c0_i32 = arith.constant 0 : i32
    %c0_i32_0 = arith.constant 0 : i32
    %c0_i32_1 = arith.constant 0 : i32
    %c0_i32_2 = arith.constant 0 : i32
    return %c0_i32, %c0_i32_0, %c0_i32_1 : i32, i32, i32
  }
  func.func @transform_2(%arg0: i32) -> (i32, i32) {
    %c0_i32 = arith.constant 0 : i32
    %c0_i32_0 = arith.constant 0 : i32
    %c0_i32_1 = arith.constant 0 : i32
    return %c0_i32, %c0_i32_0 : i32, i32
  }
  func.func @transform_3(%arg0: i32) -> (i32, i32) {
    %c0_i32 = arith.constant 0 : i32
    %c0_i32_0 = arith.constant 0 : i32
    return %arg0, %c0_i32 : i32, i32
  }
}

</mosaic_0001>

<bundles_post_ra>
// kernel: _lambda_.1
= control target key start
LH: loop header
LB: loop body
LE: loop exit
PB: predicated region body
PF: predicated region fallthrough
CT: control target
= control target key end

     0   :  { %s5683_s12 = smov 0   ;;  %s6183_s0 = inlined_call_operand.vmem [shape: bf16[3192,96], index: 0, kind: input, shape index: {}]   ;;  %s6184_s1 = inlined_call_operand.vmem [shape: bf16[4,96,128], index: 1, kind: input, shape index: {}]   ;;  %s6185_s2 = inlined_call_operand.vmem [shape: f32[1,128], index: 2, kind: input, shape index: {}]   ;;  %s6186_s3 = inlined_call_operand.vmem [shape: bf16[3072,128], index: 3, kind: output, shape index: {}]  }
   0x1 LB: > { %s3753_s13 = sadd.s32 4294967295, %s5661_s12   ;;  %p3756_p0 = scmp.ge.s32.totalorder %s5661_s12, 1  ;;  %s5661_s12 = sphi %s5683_s12, %s13_s12  }
   0x2   : > { %p103_p1 = scmp.lt.s32.totalorder %s5661_s12, 5 }
   0x4   : > { %p104_p2 = pnand %p3756_p0, %p103_p1 }
   0x5   : > { %s120_s14 = smul.u32 (!%p104_p2), 96, %s3753_s13 }
   0x6   : > { %107 = sbr.rel (%p104_p2) target bundleno = 1004 (0x3ec), region = 28 }
   0x7   : > { %s127_s15 = smul.u32 (!%p104_p2), 768, %s3753_s13  ;;  %p121_p3 = scmp.lt.s32.totalorder (!%p104_p2), %s120_s14, 383 }
   0x9   : > { %s128_s16 = sshra.s32 (!%p104_p2), %s127_s15, 3 }
   0xa   : > { %s3758_s17 = sshll.u32 (!%p104_p2), %s128_s16, 2 }
   0xb   : > { %s6188_s14 = smov (!%p121_p3, %s120_s14), 383  ;;  %s5694_s21 = scalar_lea.vmem %s6183_s0, %s3758_s17 }
   0xc   : > { %s3757_s18 = sshll.u32 %s6188_s14, 2  ;;  %v144_v0 = vld [vmem:[%s5694_s21] sm:$0xff]  ;;  %v146_v1 = vld [vmem:[%s5694_s21 + $0x8] sm:$0xff]  ;;  %v148_v2 = vld [vmem:[%s5694_s21 + $0x10] sm:$0xff] }
   0xd   : > { %s5699_s24 = scalar_lea.vmem %s6186_s3, %s3757_s18  ;;  %145 = vst [vmem:[#allocation2] sm:$0xff] %v144_v0  ;;  %v150_v3 = vld [vmem:[%s5694_s21 + $0x18] sm:$0xff]  ;;  %v152_v4 = vld [vmem:[%s5694_s21 + $0x20] sm:$0xff]  ;;  %v154_v5 = vld [vmem:[%s5694_s21 + $0x28] sm:$0xff] }
   0xe   : > { %147 = vst [vmem:[#allocation2 + $0x8] sm:$0xff] %v146_v1  ;;  %v156_v6 = vld [vmem:[%s5694_s21 + $0x30] sm:$0xff]  ;;  %v158_v7 = vld [vmem:[%s5694_s21 + $0x38] sm:$0xff]  ;;  %v160_v8 = vld [vmem:[%s5694_s21 + $0x40] sm:$0xff] }
   0xf   : > { %149 = vst [vmem:[#allocation2 + $0x10] sm:$0xff] %v148_v2  ;;  %v162_v9 = vld [vmem:[%s5694_s21 + $0x48] sm:$0xff]  ;;  %v164_v10 = vld [vmem:[%s5694_s21 + $0x50] sm:$0xff]  ;;  %v166_v11 = vld [vmem:[%s5694_s21 + $0x58] sm:$0xff] }
  0x10   : > { %151 = vst [vmem:[#allocation2 + $0x18] sm:$0xff] %v150_v3  ;;  %v168_v12 = vld [vmem:[%s5694_s21 + $0x60] sm:$0xff]  ;;  %v170_v13 = vld [vmem:[%s5694_s21 + $0x68] sm:$0xff]  ;;  %v172_v14 = vld [vmem:[%s5694_s21 + $0x70] sm:$0xff] }
  0x11   : > { %153 = vst [vmem:[#allocation2 + $0x20] sm:$0xff] %v152_v4  ;;  %v174_v15 = vld [vmem:[%s5694_s21 + $0x78] sm:$0xff]  ;;  %v176_v16 = vld [vmem:[%s5694_s21 + $0x80] sm:$0xff]  ;;  %v178_v17 = vld [vmem:[%s5694_s21 + $0x88] sm:$0xff] }
  0x12   : > { %155 = vst [vmem:[#allocation2 + $0x28] sm:$0xff] %v154_v5  ;;  %v180_v18 = vld [vmem:[%s5694_s21 + $0x90] sm:$0xff]  ;;  %v182_v19 = vld [vmem:[%s5694_s21 + $0x98] sm:$0xff]  ;;  %v184_v20 = vld [vmem:[%s5694_s21 + $0xa0] sm:$0xff] }
  0x13   : > { %157 = vst [vmem:[#allocation2 + $0x30] sm:$0xff] %v156_v6  ;;  %v186_v21 = vld [vmem:[%s5694_s21 + $0xa8] sm:$0xff]  ;;  %v188_v22 = vld [vmem:[%s5694_s21 + $0xb0] sm:$0xff]  ;;  %v190_v23 = vld [vmem:[%s5694_s21 + $0xb8] sm:$0xff] }
  0x14   : > { %159 = vst [vmem:[#allocation2 + $0x38] sm:$0xff] %v158_v7  ;;  %v192_v24 = vld [vmem:[%s5694_s21 + $0xc0] sm:$0xff]  ;;  %v194_v25 = vld [vmem:[%s5694_s21 + $0xc8] sm:$0xff]  ;;  %v196_v26 = vld [vmem:[%s5694_s21 + $0xd0] sm:$0xff] }
  0x15   : > { %161 = vst [vmem:[#allocation2 + $0x40] sm:$0xff] %v160_v8  ;;  %v198_v27 = vld [vmem:[%s5694_s21 + $0xd8] sm:$0xff]  ;;  %v200_v28 = vld [vmem:[%s5694_s21 + $0xe0] sm:$0xff]  ;;  %v202_v29 = vld [vmem:[%s5694_s21 + $0xe8] sm:$0xff] }
  0x16   : > { %163 = vst [vmem:[#allocation2 + $0x48] sm:$0xff] %v162_v9  ;;  %v204_v30 = vld [vmem:[%s5694_s21 + $0xf0] sm:$0xff]  ;;  %v206_v31 = vld [vmem:[%s5694_s21 + $0xf8] sm:$0xff]  ;;  %v208_v32 = vld [vmem:[%s5694_s21 + $0x100] sm:$0xff] }
  0x17   : > { %165 = vst [vmem:[#allocation2 + $0x50] sm:$0xff] %v164_v10  ;;  %v210_v33 = vld [vmem:[%s5694_s21 + $0x108] sm:$0xff]  ;;  %v212_v34 = vld [vmem:[%s5694_s21 + $0x110] sm:$0xff]  ;;  %v214_v35 = vld [vmem:[%s5694_s21 + $0x118] sm:$0xff] }
  0x18   : > { %167 = vst [vmem:[#allocation2 + $0x58] sm:$0xff] %v166_v11  ;;  %v216_v36 = vld [vmem:[%s5694_s21 + $0x120] sm:$0xff]  ;;  %v218_v37 = vld [vmem:[%s5694_s21 + $0x128] sm:$0xff]  ;;  %v220_v38 = vld [vmem:[%s5694_s21 + $0x130] sm:$0xff] }
  0x19   : > { %169 = vst [vmem:[#allocation2 + $0x60] sm:$0xff] %v168_v12  ;;  %v222_v39 = vld [vmem:[%s5694_s21 + $0x138] sm:$0xff]  ;;  %v224_v40 = vld [vmem:[%s5694_s21 + $0x140] sm:$0xff]  ;;  %v226_v41 = vld [vmem:[%s5694_s21 + $0x148] sm:$0xff] }
  0x1a   : > { %171 = vst [vmem:[#allocation2 + $0x68] sm:$0xff] %v170_v13  ;;  %v228_v42 = vld [vmem:[%s5694_s21 + $0x150] sm:$0xff]  ;;  %v230_v43 = vld [vmem:[%s5694_s21 + $0x158] sm:$0xff]  ;;  %v232_v44 = vld [vmem:[%s5694_s21 + $0x160] sm:$0xff] }
  0x1b   : > { %173 = vst [vmem:[#allocation2 + $0x70] sm:$0xff] %v172_v14  ;;  %v234_v45 = vld [vmem:[%s5694_s21 + $0x168] sm:$0xff]  ;;  %v236_v46 = vld [vmem:[%s5694_s21 + $0x170] sm:$0xff]  ;;  %v238_v47 = vld [vmem:[%s5694_s21 + $0x178] sm:$0xff] }
  0x1c   : > { %175 = vst [vmem:[#allocation2 + $0x78] sm:$0xff] %v174_v15  ;;  %v240_v48 = vld [vmem:[%s5694_s21 + $0x180] sm:$0xff]  ;;  %v242_v49 = vld [vmem:[%s5694_s21 + $0x188] sm:$0xff]  ;;  %v244_v50 = vld [vmem:[%s5694_s21 + $0x190] sm:$0xff] }
  0x1d   : > { %177 = vst [vmem:[#allocation2 + $0x80] sm:$0xff] %v176_v16  ;;  %v246_v51 = vld [vmem:[%s5694_s21 + $0x198] sm:$0xff]  ;;  %v248_v52 = vld [vmem:[%s5694_s21 + $0x1a0] sm:$0xff]  ;;  %v250_v53 = vld [vmem:[%s5694_s21 + $0x1a8] sm:$0xff] }
  0x1e   : > { %179 = vst [vmem:[#allocation2 + $0x88] sm:$0xff] %v178_v17  ;;  %v252_v54 = vld [vmem:[%s5694_s21 + $0x1b0] sm:$0xff]  ;;  %v3759_v55 = vld [vmem:[%s5694_s21 + $0x1b8] sm:$0xf] }
  0x1f   : > { %181 = vst [vmem:[#allocation2 + $0x90] sm:$0xff] %v180_v18 }
  0x20   : > { %183 = vst [vmem:[#allocation2 + $0x98] sm:$0xff] %v182_v19 }
  0x21   : > { %185 = vst [vmem:[#allocation2 + $0xa0] sm:$0xff] %v184_v20 }
  0x22   : > { %187 = vst [vmem:[#allocation2 + $0xa8] sm:$0xff] %v186_v21 }
  0x23   : > { %189 = vst [vmem:[#allocation2 + $0xb0] sm:$0xff] %v188_v22 }
  0x24   : > { %191 = vst [vmem:[#allocation2 + $0xb8] sm:$0xff] %v190_v23 }
  0x25   : > { %193 = vst [vmem:[#allocation2 + $0xc0] sm:$0xff] %v192_v24 }
  0x26   : > { %195 = vst [vmem:[#allocation2 + $0xc8] sm:$0xff] %v194_v25 }
  0x27   : > { %197 = vst [vmem:[#allocation2 + $0xd0] sm:$0xff] %v196_v26 }
  0x28   : > { %199 = vst [vmem:[#allocation2 + $0xd8] sm:$0xff] %v198_v27 }
  0x29   : > { %201 = vst [vmem:[#allocation2 + $0xe0] sm:$0xff] %v200_v28 }
  0x2a   : > { %203 = vst [vmem:[#allocation2 + $0xe8] sm:$0xff] %v202_v29 }
  0x2b   : > { %205 = vst [vmem:[#allocation2 + $0xf0] sm:$0xff] %v204_v30 }
  0x2c   : > { %207 = vst [vmem:[#allocation2 + $0xf8] sm:$0xff] %v206_v31 }
  0x2d   : > { %209 = vst [vmem:[#allocation2 + $0x100] sm:$0xff] %v208_v32 }
  0x2e   : > { %211 = vst [vmem:[#allocation2 + $0x108] sm:$0xff] %v210_v33 }
  0x2f   : > { %213 = vst [vmem:[#allocation2 + $0x110] sm:$0xff] %v212_v34 }
  0x30   : > { %215 = vst [vmem:[#allocation2 + $0x118] sm:$0xff] %v214_v35 }
  0x31   : > { %217 = vst [vmem:[#allocation2 + $0x120] sm:$0xff] %v216_v36 }
  0x32   : > { %219 = vst [vmem:[#allocation2 + $0x128] sm:$0xff] %v218_v37 }
  0x33   : > { %221 = vst [vmem:[#allocation2 + $0x130] sm:$0xff] %v220_v38 }
  0x34   : > { %223 = vst [vmem:[#allocation2 + $0x138] sm:$0xff] %v222_v39 }
  0x35   : > { %225 = vst [vmem:[#allocation2 + $0x140] sm:$0xff] %v224_v40 }
  0x36   : > { %227 = vst [vmem:[#allocation2 + $0x148] sm:$0xff] %v226_v41 }
  0x37   : > { %229 = vst [vmem:[#allocation2 + $0x150] sm:$0xff] %v228_v42 }
  0x38   : > { %231 = vst [vmem:[#allocation2 + $0x158] sm:$0xff] %v230_v43 }
  0x39   : > { %233 = vst [vmem:[#allocation2 + $0x160] sm:$0xff] %v232_v44 }
  0x3a   : > { %235 = vst [vmem:[#allocation2 + $0x168] sm:$0xff] %v234_v45 }
  0x3b   : > { %237 = vst [vmem:[#allocation2 + $0x170] sm:$0xff] %v236_v46 }
  0x3c   : > { %239 = vst [vmem:[#allocation2 + $0x178] sm:$0xff] %v238_v47 }
  0x3d   : > { %241 = vst [vmem:[#allocation2 + $0x180] sm:$0xff] %v240_v48 }
  0x3e   : > { %243 = vst [vmem:[#allocation2 + $0x188] sm:$0xff] %v242_v49 }
  0x3f   : > { %245 = vst [vmem:[#allocation2 + $0x190] sm:$0xff] %v244_v50 }
  0x40   : > { %247 = vst [vmem:[#allocation2 + $0x198] sm:$0xff] %v246_v51 }
  0x41   : > { %249 = vst [vmem:[#allocation2 + $0x1a0] sm:$0xff] %v248_v52 }
  0x42   : > { %251 = vst [vmem:[#allocation2 + $0x1a8] sm:$0xff] %v250_v53 }
  0x43   : > { %253 = vst [vmem:[#allocation2 + $0x1b0] sm:$0xff] %v252_v54 }
  0x44   : > { %265 = vst [vmem:[#allocation2 + $0x1b8] sm:$0xf] %v3759_v55 }
  0x45   : > { %269 = vsyncadd [#allocation3], 7104 }
  0x46   : > { %5657 = dma.done.wait [#allocation3], 7104 }
  0x47   : > { %5658 = vsyncadd [#allocation3], 4294960192  ;;  %v4502_v56 = vld [vmem:[%s6184_s1 + $0x58] sm:$0xff]  ;;  %v4494_v57 = vld [vmem:[%s6184_s1 + $0x28] sm:$0xff]  ;;  %vm676_vm0 = vcmask 785408  }
  0x48   : > { %v4556_v58 = vld [vmem:[%s6184_s1 + $0x88] sm:$0xff]  ;;  %v4610_v59 = vld [vmem:[%s6184_s1 + $0xb8] sm:$0xff]  ;;  %823 = vmatpush.bf16.msra.mxu0 %v4502_v56  ;;  %1310 = vmatpush.bf16.msra.mxu1 %v4494_v57  ;;  %v4501_v60 = vld [vmem:[%s6184_s1 + $0x50] sm:$0xff] }
  0x49   : > { %v4493_v61 = vld [vmem:[%s6184_s1 + $0x20] sm:$0xff]  ;;  %2088 = vmatpush.bf16.msra.mxu2 %v4556_v58  ;;  %2962 = vmatpush.bf16.msra.mxu3 %v4610_v59  ;;  %v4609_v63 = vld [vmem:[%s6184_s1 + $0xb0] sm:$0xff]  ;;  %v4500_v0 = vld [vmem:[%s6184_s1 + $0x48] sm:$0xff] }
  0x4a   : > { %v4555_v62 = vld [vmem:[%s6184_s1 + $0x80] sm:$0xff]  ;;  %v4492_v1 = vld [vmem:[%s6184_s1 + $0x18] sm:$0xff]  ;;  %v4608_v3 = vld [vmem:[%s6184_s1 + $0xa8] sm:$0xff] }
  0x4b   : > { %v4554_v2 = vld [vmem:[%s6184_s1 + $0x78] sm:$0xff]  ;;  %v4499_v4 = vld [vmem:[%s6184_s1 + $0x40] sm:$0xff]  ;;  %v4491_v5 = vld [vmem:[%s6184_s1 + $0x10] sm:$0xff] }
  0x4c   : > { %824 = vmatpush.bf16.msra.mxu0 %v4501_v60  ;;  %1311 = vmatpush.bf16.msra.mxu1 %v4493_v61  ;;  %v4553_v6 = vld [vmem:[%s6184_s1 + $0x70] sm:$0xff]  ;;  %v4607_v7 = vld [vmem:[%s6184_s1 + $0xa0] sm:$0xff]  ;;  %v4498_v8 = vld [vmem:[%s6184_s1 + $0x38] sm:$0xff] }
  0x4d   : > { %2089 = vmatpush.bf16.msra.mxu2 %v4555_v62  ;;  %2963 = vmatpush.bf16.msra.mxu3 %v4609_v63  ;;  %v4490_v9 = vld [vmem:[%s6184_s1 + $0x8] sm:$0xff]  ;;  %v4606_v11 = vld [vmem:[%s6184_s1 + $0x98] sm:$0xff]  ;;  %v4497_v12 = vld [vmem:[%s6184_s1 + $0x30] sm:$0xff] }
  0x4e   : > { %v4552_v10 = vld [vmem:[%s6184_s1 + $0x68] sm:$0xff]  ;;  %v4489_v13 = vld [vmem:[%s6184_s1] sm:$0xff]  ;;  %v4605_v15 = vld [vmem:[%s6184_s1 + $0x90] sm:$0xff] }
  0x4f   : > { %v4551_v14 = vld [vmem:[%s6184_s1 + $0x60] sm:$0xff]  ;;  %v5360_v16 = vld [vmem:[#allocation2 + $0x14] sm:$0xff]   ;;  %v4503_v18 = vld [vmem:[#allocation2 + $0x28] sm:$0xff] }
  0x50   : > { %825 = vmatpush.bf16.msra.mxu0 %v4500_v0  ;;  %1312 = vmatpush.bf16.msra.mxu1 %v4492_v1  ;;  %v4487_v17 = vld [vmem:[#allocation2] sm:$0xff]  ;;  %v4488_v21 = vld [vmem:[#allocation2 + $0x8] sm:$0xff]  ;;  %v4504_v22 = vld [vmem:[#allocation2 + $0x30] sm:$0xff] }
  0x51   : > { %2090 = vmatpush.bf16.msra.mxu2 %v4554_v2  ;;  %2964 = vmatpush.bf16.msra.mxu3 %v4608_v3  ;;  %v4557_v19 = vld [vmem:[#allocation2 + $0x3c] sm:$0xff]  ;;  %v4558_v23 = vld [vmem:[#allocation2 + $0x44] sm:$0xff]  ;;  %v5035_v25 = vld [vmem:[#allocation2 + $0x10] sm:$0xff]  }
  0x52   : > { %v5362_v20 = vld [vmem:[#allocation2 + $0x1c] sm:$0xff]   ;;  %v5364_v24 = vld [vmem:[#allocation2 + $0x24] sm:$0xff]   ;;  %v4559_v27 = vld [vmem:[#allocation2 + $0x4c] sm:$0xff] }
  0x53   : > { %v4505_v26 = vld [vmem:[#allocation2 + $0x38] sm:$0xff]  ;;  %v5366_v28 = vld [vmem:[#allocation2 + $0x2c] sm:$0xff]   ;;  %v4506_v30 = vld [vmem:[#allocation2 + $0x40] sm:$0xff] }
  0x54   : > { %826 = vmatpush.bf16.msra.mxu0 %v4499_v4  ;;  %1313 = vmatpush.bf16.msra.mxu1 %v4491_v5  ;;  %v5036_v29 = vld [vmem:[#allocation2 + $0x18] sm:$0xff]   ;;  %v5037_v33 = vld [vmem:[#allocation2 + $0x20] sm:$0xff]   ;;  %v4507_v34 = vld [vmem:[#allocation2 + $0x48] sm:$0xff] }
  0x55   : > { %2091 = vmatpush.bf16.msra.mxu2 %v4553_v6  ;;  %2965 = vmatpush.bf16.msra.mxu3 %v4607_v7  ;;  %v4560_v31 = vld [vmem:[#allocation2 + $0x54] sm:$0xff]  ;;  %v4561_v35 = vld [vmem:[#allocation2 + $0x5c] sm:$0xff]  ;;  %v5038_v37 = vld [vmem:[#allocation2 + $0x28] sm:$0xff]  }
  0x56   : > { %v5368_v32 = vld [vmem:[#allocation2 + $0x34] sm:$0xff]   ;;  %v5370_v36 = vld [vmem:[#allocation2 + $0x3c] sm:$0xff]   ;;  %v4562_v39 = vld [vmem:[#allocation2 + $0x64] sm:$0xff] }
  0x57   : > { %v4508_v38 = vld [vmem:[#allocation2 + $0x50] sm:$0xff]  ;;  %v5372_v40 = vld [vmem:[#allocation2 + $0x44] sm:$0xff]   ;;  %v4509_v42 = vld [vmem:[#allocation2 + $0x58] sm:$0xff] }
  0x58   : > { %827 = vmatpush.bf16.msra.mxu0 %v4498_v8  ;;  %1314 = vmatpush.bf16.msra.mxu1 %v4490_v9  ;;  %v5039_v41 = vld [vmem:[#allocation2 + $0x30] sm:$0xff]   ;;  %v5040_v45 = vld [vmem:[#allocation2 + $0x38] sm:$0xff]   ;;  %v4510_v46 = vld [vmem:[#allocation2 + $0x60] sm:$0xff] }
  0x59   : > { %2092 = vmatpush.bf16.msra.mxu2 %v4552_v10  ;;  %2966 = vmatpush.bf16.msra.mxu3 %v4606_v11  ;;  %v4563_v43 = vld [vmem:[#allocation2 + $0x6c] sm:$0xff]  ;;  %v4564_v47 = vld [vmem:[#allocation2 + $0x74] sm:$0xff]  ;;  %v5041_v51 = vld [vmem:[#allocation2 + $0x40] sm:$0xff]  }
  0x5a   : > { %v5374_v44 = vld [vmem:[#allocation2 + $0x4c] sm:$0xff]   ;;  %v5376_v48 = vld [vmem:[#allocation2 + $0x54] sm:$0xff]   ;;  %v4565_v53 = vld [vmem:[#allocation2 + $0x7c] sm:$0xff] }
  0x5b   : > { %v4511_v52 = vld [vmem:[#allocation2 + $0x68] sm:$0xff]  ;;  %v5868_v61 = vld [vmem:[%s6185_s2] ss:$0 sm:$0xff]  ;;  %v4512_v6 = vld [vmem:[#allocation2 + $0x70] sm:$0xff] }
  0x5c   : > { %828 = vmatpush.bf16.msra.mxu0 %v4497_v12  ;;  %1315 = vmatpush.bf16.msra.mxu1 %v4489_v13  ;;  %v5378_v1 = vld [vmem:[#allocation2 + $0x5c] sm:$0xff]   ;;  %v5042_v5 = vld [vmem:[#allocation2 + $0x48] sm:$0xff]  }
  0x5d   : > { %2093 = vmatpush.bf16.msra.mxu2 %v4551_v14  ;;  %2967 = vmatpush.bf16.msra.mxu3 %v4605_v15  ;;  %v4566_v7 = vld [vmem:[#allocation2 + $0x84] sm:$0xff] }
  0x5f   : > { %3804 = vmatmul.msk.bf16.vlgmr.msra.gmra.mxu0 %vm676_vm0, %v5360_v16  ;;  %3884 = vmatmul.msk.bf16.vlgmr.msra.gmra.mxu1 %vm676_vm0, %v4487_v17 }
  0x60   : > { %4160 = vmatmul.msk.bf16.vlgmr.msra.gmra.mxu2 %vm676_vm0, %v4503_v18  ;;  %4436 = vmatmul.msk.bf16.vlgmr.msra.gmra.mxu3 %vm676_vm0, %v4557_v19 }
  0x6f   : > { %3805 = vmatmul.msk.bf16.gmra.mxu0 %vm676_vm0, %v5362_v20  ;;  %3885 = vmatmul.msk.bf16.gmra.mxu1 %vm676_vm0, %v4488_v21 }
  0x70   : > { %4161 = vmatmul.msk.bf16.gmra.mxu2 %vm676_vm0, %v4504_v22  ;;  %4437 = vmatmul.msk.bf16.gmra.mxu3 %vm676_vm0, %v4558_v23 }
  0x7f   : > { %3806 = vmatmul.msk.bf16.gmra.mxu0 %vm676_vm0, %v5364_v24  ;;  %3886 = vmatmul.msk.bf16.gmra.mxu1 %vm676_vm0, %v5035_v25  ;;  %v5380_v24 = vld [vmem:[#allocation2 + $0x64] sm:$0xff]  }
  0x80   : > { %4162 = vmatmul.msk.bf16.gmra.mxu2 %vm676_vm0, %v4505_v26  ;;  %4438 = vmatmul.msk.bf16.gmra.mxu3 %vm676_vm0, %v4559_v27 }
  0x8f   : > { %3807 = vmatmul.msk.bf16.gmra.mxu0 %vm676_vm0, %v5366_v28  ;;  %3887 = vmatmul.msk.bf16.gmra.mxu1 %vm676_vm0, %v5036_v29  ;;  %v5043_v28 = vld [vmem:[#allocation2 + $0x50] sm:$0xff]   ;;  %v4513_v29 = vld [vmem:[#allocation2 + $0x78] sm:$0xff] }
  0x90   : > { %4163 = vmatmul.msk.bf16.gmra.mxu2 %vm676_vm0, %v4506_v30  ;;  %4439 = vmatmul.msk.bf16.gmra.mxu3 %vm676_vm0, %v4560_v31  ;;  %v4567_v30 = vld [vmem:[#allocation2 + $0x8c] sm:$0xff] }
  0x9f   : > { %3808 = vmatmul.msk.bf16.gmra.mxu0 %vm676_vm0, %v5368_v32  ;;  %3888 = vmatmul.msk.bf16.gmra.mxu1 %vm676_vm0, %v5037_v33 }
  0xa0   : > { %4164 = vmatmul.msk.bf16.gmra.mxu2 %vm676_vm0, %v4507_v34  ;;  %4440 = vmatmul.msk.bf16.gmra.mxu3 %vm676_vm0, %v4561_v35 }
  0xaf   : > { %3809 = vmatmul.msk.bf16.gmra.mxu0 %vm676_vm0, %v5370_v36  ;;  %3889 = vmatmul.msk.bf16.gmra.mxu1 %vm676_vm0, %v5038_v37 }
  0xb0   : > { %4165 = vmatmul.msk.bf16.gmra.mxu2 %vm676_vm0, %v4508_v38  ;;  %4441 = vmatmul.msk.bf16.gmra.mxu3 %vm676_vm0, %v4562_v39 }
  0xbf   : > { %3810 = vmatmul.msk.bf16.gmra.mxu0 %vm676_vm0, %v5372_v40  ;;  %3890 = vmatmul.msk.bf16.gmra.mxu1 %vm676_vm0, %v5039_v41 }
  0xc0   : > { %4166 = vmatmul.msk.bf16.gmra.mxu2 %vm676_vm0, %v4509_v42  ;;  %4442 = vmatmul.msk.bf16.gmra.mxu3 %vm676_vm0, %v4563_v43 }
  0xcf   : > { %3811 = vmatmul.msk.bf16.gmra.mxu0 %vm676_vm0, %v5374_v44  ;;  %3891 = vmatmul.msk.bf16.gmra.mxu1 %vm676_vm0, %v5040_v45 }
  0xd0   : > { %4167 = vmatmul.msk.bf16.gmra.mxu2 %vm676_vm0, %v4510_v46  ;;  %4443 = vmatmul.msk.bf16.gmra.mxu3 %vm676_vm0, %v4564_v47  ;;  %v5382_v47 = vld [vmem:[#allocation2 + $0x6c] sm:$0xff]  }
  0xdc   : > { %v830_v49 = vpop.f32.mrf.mxu0  ;;  %v1317_v50 = vpop.f32.mrf.mxu1 }
  0xdd   : > { %v1318_v54 = vadd.f32 %v1317_v50, %v830_v49 }
  0xdf   : > { %3812 = vmatmul.msk.bf16.gmra.mxu0 %vm676_vm0, %v5376_v48  ;;  %3892 = vmatmul.msk.bf16.gmra.mxu1 %vm676_vm0, %v5041_v51  ;;  %v5044_v51 = vld [vmem:[#allocation2 + $0x58] sm:$0xff]  }
  0xe0   : > { %4168 = vmatmul.msk.bf16.gmra.mxu2 %vm676_vm0, %v4511_v52  ;;  %4444 = vmatmul.msk.bf16.gmra.mxu3 %vm676_vm0, %v4565_v53  ;;  %v4514_v52 = vld [vmem:[#allocation2 + $0x80] sm:$0xff]  ;;  %v4568_v53 = vld [vmem:[#allocation2 + $0x94] sm:$0xff] }
  0xe3   : > { %v2095_v55 = vpop.f32.mrf.mxu2  ;;  %v2969_v56 = vpop.f32.mrf.mxu3 }
  0xe4   : > { %v832_v57 = vpop.f32.mrf.mxu0  ;;  %v1319_v58 = vpop.f32.mrf.mxu1  ;;  %v2335_v59 = vadd.f32 %v2095_v55, %v1318_v54 }
  0xe5   : > { %v1320_v62 = vadd.f32 %v1319_v58, %v832_v57 }
  0xe6   : > { %v3209_v60 = vadd.f32 %v2969_v56, %v2335_v59 }
  0xe8   : > { %v3309_v8 = vadd.f32 %v5868_v61, %v3209_v60 }
  0xea   : > { %5459 = vtanh.f32 %v3309_v8 }
  0xeb   : > { %v2097_v63 = vpop.f32.mrf.mxu2  ;;  %v2971_v0 = vpop.f32.mrf.mxu3 }
  0xec   : > { %v2336_v2 = vadd.f32 %v2097_v63, %v1320_v62  ;;  %v835_v3 = vpop.f32.mrf.mxu0  ;;  %v1322_v4 = vpop.f32.mrf.mxu1 }
  0xed   : > { %v1323_v11 = vadd.f32 %v1322_v4, %v835_v3 }
  0xee   : > { %v3210_v9 = vadd.f32 %v2971_v0, %v2336_v2 }
  0xef   : > { %3813 = vmatmul.msk.bf16.gmra.mxu0 %vm676_vm0, %v5378_v1  ;;  %3893 = vmatmul.msk.bf16.gmra.mxu1 %vm676_vm0, %v5042_v5 }
  0xf0   : > { %v3310_v10 = vadd.f32 %v5868_v61, %v3210_v9  ;;  %4169 = vmatmul.msk.bf16.gmra.mxu2 %vm676_vm0, %v4512_v6  ;;  %4445 = vmatmul.msk.bf16.gmra.mxu3 %vm676_vm0, %v4566_v7  ;;  %v5460_v17 = vpop.eup %5459  ;;  %v5384_v7 = vld [vmem:[#allocation2 + $0x74] sm:$0xff]  }
  0xf2   : > { %5461 = vtanh.f32 %v3310_v10 }
  0xf3   : > { %v2100_v12 = vpop.f32.mrf.mxu2  ;;  %v2974_v13 = vpop.f32.mrf.mxu3 }
  0xf4   : > { %v837_v14 = vpop.f32.mrf.mxu0  ;;  %v1324_v15 = vpop.f32.mrf.mxu1  ;;  %v2337_v16 = vadd.f32 %v2100_v12, %v1323_v11  ;;  %v5045_v11 = vld [vmem:[#allocation2 + $0x60] sm:$0xff]   ;;  %v4515_v12 = vld [vmem:[#allocation2 + $0x88] sm:$0xff] }
  0xf5   : > { %v1325_v21 = vadd.f32 %v1324_v15, %v837_v14 }
  0xf6   : > { %v3211_v20 = vadd.f32 %v2974_v13, %v2337_v16  ;;  %v4569_v13 = vld [vmem:[#allocation2 + $0x9c] sm:$0xff] }
  0xf8   : > { %v5462_v18 = vpop.eup %5461  ;;  %v3311_v31 = vadd.f32 %v5868_v61, %v3211_v20 }
  0xf9   : > { %v4798_v19 = vpack.c.bf16 %v5462_v18, %v5460_v17 }
  0xfa   : > { %5463 = vtanh.f32 %v3311_v31 }
  0xfb   : > { %4799 = vst [vmem:[%s5699_s24] sm:$0xff] %v4798_v19   ;;  %v2102_v22 = vpop.f32.mrf.mxu2  ;;  %v2976_v23 = vpop.f32.mrf.mxu3 }
  0xfc   : > { %v2338_v25 = vadd.f32 %v2102_v22, %v1325_v21  ;;  %v840_v26 = vpop.f32.mrf.mxu0  ;;  %v1327_v27 = vpop.f32.mrf.mxu1 }
  0xfd   : > { %v1328_v34 = vadd.f32 %v1327_v27, %v840_v26 }
  0xfe   : > { %v3212_v32 = vadd.f32 %v2976_v23, %v2338_v25 }
  0xff   : > { %3814 = vmatmul.msk.bf16.gmra.mxu0 %vm676_vm0, %v5380_v24  ;;  %3894 = vmatmul.msk.bf16.gmra.mxu1 %vm676_vm0, %v5043_v28 }
 0x100   : > { %v3312_v33 = vadd.f32 %v5868_v61, %v3212_v32  ;;  %4170 = vmatmul.msk.bf16.gmra.mxu2 %vm676_vm0, %v4513_v29  ;;  %4446 = vmatmul.msk.bf16.gmra.mxu3 %vm676_vm0, %v4567_v30  ;;  %v5464_v40 = vpop.eup %5463  ;;  %v5386_v30 = vld [vmem:[#allocation2 + $0x7c] sm:$0xff]  }
 0x102   : > { %5465 = vtanh.f32 %v3312_v33 }
 0x103   : > { %v2105_v35 = vpop.f32.mrf.mxu2  ;;  %v2979_v36 = vpop.f32.mrf.mxu3 }
 0x104   : > { %v842_v37 = vpop.f32.mrf.mxu0  ;;  %v1329_v38 = vpop.f32.mrf.mxu1  ;;  %v2339_v39 = vadd.f32 %v2105_v35, %v1328_v34  ;;  %v5046_v34 = vld [vmem:[#allocation2 + $0x68] sm:$0xff]   ;;  %v4516_v35 = vld [vmem:[#allocation2 + $0x90] sm:$0xff] }
 0x105   : > { %v1330_v44 = vadd.f32 %v1329_v38, %v842_v37 }
 0x106   : > { %v3213_v43 = vadd.f32 %v2979_v36, %v2339_v39  ;;  %v4570_v36 = vld [vmem:[#allocation2 + $0xa4] sm:$0xff] }
 0x108   : > { %v5466_v41 = vpop.eup %5465  ;;  %v3313_v54 = vadd.f32 %v5868_v61, %v3213_v43 }
 0x109   : > { %v4803_v42 = vpack.c.bf16 %v5466_v41, %v5464_v40 }
 0x10a   : > { %5467 = vtanh.f32 %v3313_v54 }
 0x10b   : > { %5081 = vst [vmem:[%s5699_s24 + $0x8] sm:$0xff] %v4803_v42   ;;  %v2107_v45 = vpop.f32.mrf.mxu2  ;;  %v2981_v46 = vpop.f32.mrf.mxu3 }
 0x10c   : > { %v2340_v48 = vadd.f32 %v2107_v45, %v1330_v44  ;;  %v845_v49 = vpop.f32.mrf.mxu0  ;;  %v1332_v50 = vpop.f32.mrf.mxu1 }
 0x10d   : > { %v1333_v57 = vadd.f32 %v1332_v50, %v845_v49 }
 0x10e   : > { %v3214_v55 = vadd.f32 %v2981_v46, %v2340_v48 }
 0x10f   : > { %3815 = vmatmul.msk.bf16.gmra.mxu0 %vm676_vm0, %v5382_v47  ;;  %3895 = vmatmul.msk.bf16.gmra.mxu1 %vm676_vm0, %v5044_v51 }
 0x110   : > { %v3314_v56 = vadd.f32 %v5868_v61, %v3214_v55  ;;  %4171 = vmatmul.msk.bf16.gmra.mxu2 %vm676_vm0, %v4514_v52  ;;  %4447 = vmatmul.msk.bf16.gmra.mxu3 %vm676_vm0, %v4568_v53  ;;  %v5468_v0 = vpop.eup %5467  ;;  %v5388_v53 = vld [vmem:[#allocation2 + $0x84] sm:$0xff]  }
 0x112   : > { %5469 = vtanh.f32 %v3314_v56 }
 0x113   : > { %v2110_v58 = vpop.f32.mrf.mxu2  ;;  %v2984_v59 = vpop.f32.mrf.mxu3 }
 0x114   : > { %v847_v60 = vpop.f32.mrf.mxu0  ;;  %v1334_v62 = vpop.f32.mrf.mxu1  ;;  %v2341_v63 = vadd.f32 %v2110_v58, %v1333_v57  ;;  %v5047_v57 = vld [vmem:[#allocation2 + $0x70] sm:$0xff]   ;;  %v4517_v58 = vld [vmem:[#allocation2 + $0x98] sm:$0xff] }
 0x115   : > { %v1335_v4 = vadd.f32 %v1334_v62, %v847_v60 }
 0x116   : > { %v3215_v3 = vadd.f32 %v2984_v59, %v2341_v63  ;;  %v4571_v59 = vld [vmem:[#allocation2 + $0xac] sm:$0xff] }
 0x118   : > { %v5470_v1 = vpop.eup %5469  ;;  %v3315_v14 = vadd.f32 %v5868_v61, %v3215_v3 }
 0x119   : > { %v4808_v2 = vpack.c.bf16 %v5470_v1, %v5468_v0 }
 0x11a   : > { %5471 = vtanh.f32 %v3315_v14 }
 0x11b   : > { %5082 = vst [vmem:[%s5699_s24 + $0x10] sm:$0xff] %v4808_v2   ;;  %v2112_v5 = vpop.f32.mrf.mxu2  ;;  %v2986_v6 = vpop.f32.mrf.mxu3 }
 0x11c   : > { %v2342_v8 = vadd.f32 %v2112_v5, %v1335_v4  ;;  %v850_v9 = vpop.f32.mrf.mxu0  ;;  %v1337_v10 = vpop.f32.mrf.mxu1 }
 0x11d   : > { %v1338_v17 = vadd.f32 %v1337_v10, %v850_v9 }
 0x11e   : > { %v3216_v15 = vadd.f32 %v2986_v6, %v2342_v8 }
 0x11f   : > { %3816 = vmatmul.msk.bf16.gmra.mxu0 %vm676_vm0, %v5384_v7  ;;  %3896 = vmatmul.msk.bf16.gmra.mxu1 %vm676_vm0, %v5045_v11 }
 0x120   : > { %v3316_v16 = vadd.f32 %v5868_v61, %v3216_v15  ;;  %4172 = vmatmul.msk.bf16.gmra.mxu2 %vm676_vm0, %v4515_v12  ;;  %4448 = vmatmul.msk.bf16.gmra.mxu3 %vm676_vm0, %v4569_v13  ;;  %v5472_v23 = vpop.eup %5471  ;;  %v5390_v13 = vld [vmem:[#allocation2 + $0x8c] sm:$0xff]  }
 0x122   : > { %5473 = vtanh.f32 %v3316_v16 }
 0x123   : > { %v2115_v18 = vpop.f32.mrf.mxu2  ;;  %v2989_v19 = vpop.f32.mrf.mxu3 }
 0x124   : > { %v852_v20 = vpop.f32.mrf.mxu0  ;;  %v1339_v21 = vpop.f32.mrf.mxu1  ;;  %v2343_v22 = vadd.f32 %v2115_v18, %v1338_v17  ;;  %v5048_v17 = vld [vmem:[#allocation2 + $0x78] sm:$0xff]   ;;  %v4518_v18 = vld [vmem:[#allocation2 + $0xa0] sm:$0xff] }
 0x125   : > { %v1340_v27 = vadd.f32 %v1339_v21, %v852_v20 }
 0x126   : > { %v3217_v26 = vadd.f32 %v2989_v19, %v2343_v22  ;;  %v4572_v19 = vld [vmem:[#allocation2 + $0xb4] sm:$0xff] }
 0x128   : > { %v5474_v24 = vpop.eup %5473  ;;  %v3317_v37 = vadd.f32 %v5868_v61, %v3217_v26 }
 0x129   : > { %v4813_v25 = vpack.c.bf16 %v5474_v24, %v5472_v23 }
 0x12a   : > { %5475 = vtanh.f32 %v3317_v37 }
 0x12b   : > { %5083 = vst [vmem:[%s5699_s24 + $0x18] sm:$0xff] %v4813_v25   ;;  %v2117_v28 = vpop.f32.mrf.mxu2  ;;  %v2991_v29 = vpop.f32.mrf.mxu3 }
 0x12c   : > { %v2344_v31 = vadd.f32 %v2117_v28, %v1340_v27  ;;  %v855_v32 = vpop.f32.mrf.mxu0  ;;  %v1342_v33 = vpop.f32.mrf.mxu1 }
 0x12d   : > { %v1343_v40 = vadd.f32 %v1342_v33, %v855_v32 }
 0x12e   : > { %v3218_v38 = vadd.f32 %v2991_v29, %v2344_v31 }
 0x12f   : > { %3817 = vmatmul.msk.bf16.gmra.mxu0 %vm676_vm0, %v5386_v30  ;;  %3897 = vmatmul.msk.bf16.gmra.mxu1 %vm676_vm0, %v5046_v34 }
 0x130   : > { %v3318_v39 = vadd.f32 %v5868_v61, %v3218_v38  ;;  %4173 = vmatmul.msk.bf16.gmra.mxu2 %vm676_vm0, %v4516_v35  ;;  %4449 = vmatmul.msk.bf16.gmra.mxu3 %vm676_vm0, %v4570_v36  ;;  %v5476_v46 = vpop.eup %5475  ;;  %v5392_v36 = vld [vmem:[#allocation2 + $0x94] sm:$0xff]  }
 0x132   : > { %5477 = vtanh.f32 %v3318_v39 }
 0x133   : > { %v2120_v41 = vpop.f32.mrf.mxu2  ;;  %v2994_v42 = vpop.f32.mrf.mxu3 }
 0x134   : > { %v857_v43 = vpop.f32.mrf.mxu0  ;;  %v1344_v44 = vpop.f32.mrf.mxu1  ;;  %v2345_v45 = vadd.f32 %v2120_v41, %v1343_v40  ;;  %v5049_v40 = vld [vmem:[#allocation2 + $0x80] sm:$0xff]   ;;  %v4519_v41 = vld [vmem:[#allocation2 + $0xa8] sm:$0xff] }
 0x135   : > { %v1345_v50 = vadd.f32 %v1344_v44, %v857_v43 }
 0x136   : > { %v3219_v49 = vadd.f32 %v2994_v42, %v2345_v45  ;;  %v4573_v42 = vld [vmem:[#allocation2 + $0xbc] sm:$0xff] }
 0x138   : > { %v5478_v47 = vpop.eup %5477  ;;  %v3319_v60 = vadd.f32 %v5868_v61, %v3219_v49 }
 0x139   : > { %v4818_v48 = vpack.c.bf16 %v5478_v47, %v5476_v46 }
 0x13a   : > { %5479 = vtanh.f32 %v3319_v60 }
 0x13b   : > { %5084 = vst [vmem:[%s5699_s24 + $0x20] sm:$0xff] %v4818_v48   ;;  %v2122_v51 = vpop.f32.mrf.mxu2  ;;  %v2996_v52 = vpop.f32.mrf.mxu3 }
 0x13c   : > { %v2346_v54 = vadd.f32 %v2122_v51, %v1345_v50  ;;  %v860_v55 = vpop.f32.mrf.mxu0  ;;  %v1347_v56 = vpop.f32.mrf.mxu1 }
 0x13d   : > { %v1348_v0 = vadd.f32 %v1347_v56, %v860_v55 }
 0x13e   : > { %v3220_v62 = vadd.f32 %v2996_v52, %v2346_v54 }
 0x13f   : > { %3818 = vmatmul.msk.bf16.gmra.mxu0 %vm676_vm0, %v5388_v53  ;;  %3898 = vmatmul.msk.bf16.gmra.mxu1 %vm676_vm0, %v5047_v57 }
 0x140   : > { %v3320_v63 = vadd.f32 %v5868_v61, %v3220_v62  ;;  %4174 = vmatmul.msk.bf16.gmra.mxu2 %vm676_vm0, %v4517_v58  ;;  %4450 = vmatmul.msk.bf16.gmra.mxu3 %vm676_vm0, %v4571_v59  ;;  %v5480_v6 = vpop.eup %5479  ;;  %v5394_v59 = vld [vmem:[#allocation2 + $0x9c] sm:$0xff]  }
 0x142   : > { %5481 = vtanh.f32 %v3320_v63 }
 0x143   : > { %v2125_v1 = vpop.f32.mrf.mxu2  ;;  %v2999_v2 = vpop.f32.mrf.mxu3 }
 0x144   : > { %v862_v3 = vpop.f32.mrf.mxu0  ;;  %v1349_v4 = vpop.f32.mrf.mxu1  ;;  %v2347_v5 = vadd.f32 %v2125_v1, %v1348_v0  ;;  %v5050_v0 = vld [vmem:[#allocation2 + $0x88] sm:$0xff]   ;;  %v4520_v1 = vld [vmem:[#allocation2 + $0xb0] sm:$0xff] }
 0x145   : > { %v1350_v10 = vadd.f32 %v1349_v4, %v862_v3 }
 0x146   : > { %v3221_v9 = vadd.f32 %v2999_v2, %v2347_v5  ;;  %v4574_v2 = vld [vmem:[#allocation2 + $0xc4] sm:$0xff] }
 0x148   : > { %v5482_v7 = vpop.eup %5481  ;;  %v3321_v20 = vadd.f32 %v5868_v61, %v3221_v9 }
 0x149   : > { %v4823_v8 = vpack.c.bf16 %v5482_v7, %v5480_v6 }
 0x14a   : > { %5483 = vtanh.f32 %v3321_v20 }
 0x14b   : > { %5085 = vst [vmem:[%s5699_s24 + $0x28] sm:$0xff] %v4823_v8   ;;  %v2127_v11 = vpop.f32.mrf.mxu2  ;;  %v3001_v12 = vpop.f32.mrf.mxu3 }
 0x14c   : > { %v2348_v14 = vadd.f32 %v2127_v11, %v1350_v10  ;;  %v865_v15 = vpop.f32.mrf.mxu0  ;;  %v1352_v16 = vpop.f32.mrf.mxu1 }
 0x14d   : > { %v1353_v23 = vadd.f32 %v1352_v16, %v865_v15 }
 0x14e   : > { %v3222_v21 = vadd.f32 %v3001_v12, %v2348_v14 }
 0x14f   : > { %3819 = vmatmul.msk.bf16.gmra.mxu0 %vm676_vm0, %v5390_v13  ;;  %3899 = vmatmul.msk.bf16.gmra.mxu1 %vm676_vm0, %v5048_v17 }
 0x150   : > { %v3322_v22 = vadd.f32 %v5868_v61, %v3222_v21  ;;  %4175 = vmatmul.msk.bf16.gmra.mxu2 %vm676_vm0, %v4518_v18  ;;  %4451 = vmatmul.msk.bf16.gmra.mxu3 %vm676_vm0, %v4572_v19  ;;  %v5484_v29 = vpop.eup %5483  ;;  %v5396_v19 = vld [vmem:[#allocation2 + $0xa4] sm:$0xff]  }
 0x152   : > { %5485 = vtanh.f32 %v3322_v22 }
 0x153   : > { %v2130_v24 = vpop.f32.mrf.mxu2  ;;  %v3004_v25 = vpop.f32.mrf.mxu3 }
 0x154   : > { %v867_v26 = vpop.f32.mrf.mxu0  ;;  %v1354_v27 = vpop.f32.mrf.mxu1  ;;  %v2349_v28 = vadd.f32 %v2130_v24, %v1353_v23  ;;  %v5051_v23 = vld [vmem:[#allocation2 + $0x90] sm:$0xff]   ;;  %v4521_v24 = vld [vmem:[#allocation2 + $0xb8] sm:$0xff] }
 0x155   : > { %v1355_v33 = vadd.f32 %v1354_v27, %v867_v26 }
 0x156   : > { %v3223_v32 = vadd.f32 %v3004_v25, %v2349_v28  ;;  %v4575_v25 = vld [vmem:[#allocation2 + $0xcc] sm:$0xff] }
 0x158   : > { %v5486_v30 = vpop.eup %5485  ;;  %v3323_v43 = vadd.f32 %v5868_v61, %v3223_v32 }
 0x159   : > { %v4828_v31 = vpack.c.bf16 %v5486_v30, %v5484_v29 }
 0x15a   : > { %5487 = vtanh.f32 %v3323_v43 }
 0x15b   : > { %5086 = vst [vmem:[%s5699_s24 + $0x30] sm:$0xff] %v4828_v31   ;;  %v2132_v34 = vpop.f32.mrf.mxu2  ;;  %v3006_v35 = vpop.f32.mrf.mxu3 }
 0x15c   : > { %v2350_v37 = vadd.f32 %v2132_v34, %v1355_v33  ;;  %v870_v38 = vpop.f32.mrf.mxu0  ;;  %v1357_v39 = vpop.f32.mrf.mxu1 }
 0x15d   : > { %v1358_v46 = vadd.f32 %v1357_v39, %v870_v38 }
 0x15e   : > { %v3224_v44 = vadd.f32 %v3006_v35, %v2350_v37 }
 0x15f   : > { %3820 = vmatmul.msk.bf16.gmra.mxu0 %vm676_vm0, %v5392_v36  ;;  %3900 = vmatmul.msk.bf16.gmra.mxu1 %vm676_vm0, %v5049_v40 }
 0x160   : > { %v3324_v45 = vadd.f32 %v5868_v61, %v3224_v44  ;;  %4176 = vmatmul.msk.bf16.gmra.mxu2 %vm676_vm0, %v4519_v41  ;;  %4452 = vmatmul.msk.bf16.gmra.mxu3 %vm676_vm0, %v4573_v42  ;;  %v5488_v52 = vpop.eup %5487  ;;  %v5398_v42 = vld [vmem:[#allocation2 + $0xac] sm:$0xff]  }
 0x162   : > { %5489 = vtanh.f32 %v3324_v45 }
 0x163   : > { %v2135_v47 = vpop.f32.mrf.mxu2  ;;  %v3009_v48 = vpop.f32.mrf.mxu3 }
 0x164   : > { %v872_v49 = vpop.f32.mrf.mxu0  ;;  %v1359_v50 = vpop.f32.mrf.mxu1  ;;  %v2351_v51 = vadd.f32 %v2135_v47, %v1358_v46  ;;  %v5052_v46 = vld [vmem:[#allocation2 + $0x98] sm:$0xff]   ;;  %v4522_v47 = vld [vmem:[#allocation2 + $0xc0] sm:$0xff] }
 0x165   : > { %v1360_v56 = vadd.f32 %v1359_v50, %v872_v49 }
 0x166   : > { %v3225_v55 = vadd.f32 %v3009_v48, %v2351_v51  ;;  %v4576_v48 = vld [vmem:[#allocation2 + $0xd4] sm:$0xff] }
 0x168   : > { %v5490_v53 = vpop.eup %5489  ;;  %v3325_v3 = vadd.f32 %v5868_v61, %v3225_v55 }
 0x169   : > { %v4833_v54 = vpack.c.bf16 %v5490_v53, %v5488_v52 }
 0x16a   : > { %5491 = vtanh.f32 %v3325_v3 }
 0x16b   : > { %5087 = vst [vmem:[%s5699_s24 + $0x38] sm:$0xff] %v4833_v54   ;;  %v2137_v57 = vpop.f32.mrf.mxu2  ;;  %v3011_v58 = vpop.f32.mrf.mxu3 }
 0x16c   : > { %v2352_v60 = vadd.f32 %v2137_v57, %v1360_v56  ;;  %v875_v62 = vpop.f32.mrf.mxu0  ;;  %v1362_v63 = vpop.f32.mrf.mxu1 }
 0x16d   : > { %v1363_v6 = vadd.f32 %v1362_v63, %v875_v62 }
 0x16e   : > { %v3226_v4 = vadd.f32 %v3011_v58, %v2352_v60 }
 0x16f   : > { %3821 = vmatmul.msk.bf16.gmra.mxu0 %vm676_vm0, %v5394_v59  ;;  %3901 = vmatmul.msk.bf16.gmra.mxu1 %vm676_vm0, %v5050_v0 }
 0x170   : > { %v3326_v5 = vadd.f32 %v5868_v61, %v3226_v4  ;;  %4177 = vmatmul.msk.bf16.gmra.mxu2 %vm676_vm0, %v4520_v1  ;;  %4453 = vmatmul.msk.bf16.gmra.mxu3 %vm676_vm0, %v4574_v2  ;;  %v5492_v12 = vpop.eup %5491  ;;  %v5400_v2 = vld [vmem:[#allocation2 + $0xb4] sm:$0xff]  }
 0x172   : > { %5493 = vtanh.f32 %v3326_v5 }
 0x173   : > { %v2140_v7 = vpop.f32.mrf.mxu2  ;;  %v3014_v8 = vpop.f32.mrf.mxu3 }
 0x174   : > { %v877_v9 = vpop.f32.mrf.mxu0  ;;  %v1364_v10 = vpop.f32.mrf.mxu1  ;;  %v2353_v11 = vadd.f32 %v2140_v7, %v1363_v6  ;;  %v5053_v6 = vld [vmem:[#allocation2 + $0xa0] sm:$0xff]   ;;  %v4523_v7 = vld [vmem:[#allocation2 + $0xc8] sm:$0xff] }
 0x175   : > { %v1365_v16 = vadd.f32 %v1364_v10, %v877_v9 }
 0x176   : > { %v3227_v15 = vadd.f32 %v3014_v8, %v2353_v11  ;;  %v4577_v8 = vld [vmem:[#allocation2 + $0xdc] sm:$0xff] }
 0x178   : > { %v5494_v13 = vpop.eup %5493  ;;  %v3327_v26 = vadd.f32 %v5868_v61, %v3227_v15 }
 0x179   : > { %v4838_v14 = vpack.c.bf16 %v5494_v13, %v5492_v12 }
 0x17a   : > { %5495 = vtanh.f32 %v3327_v26 }
 0x17b   : > { %5088 = vst [vmem:[%s5699_s24 + $0x40] sm:$0xff] %v4838_v14   ;;  %v2142_v17 = vpop.f32.mrf.mxu2  ;;  %v3016_v18 = vpop.f32.mrf.mxu3 }
 0x17c   : > { %v2354_v20 = vadd.f32 %v2142_v17, %v1365_v16  ;;  %v880_v21 = vpop.f32.mrf.mxu0  ;;  %v1367_v22 = vpop.f32.mrf.mxu1 }
 0x17d   : > { %v1368_v29 = vadd.f32 %v1367_v22, %v880_v21 }
 0x17e   : > { %v3228_v27 = vadd.f32 %v3016_v18, %v2354_v20 }
 0x17f   : > { %3822 = vmatmul.msk.bf16.gmra.mxu0 %vm676_vm0, %v5396_v19  ;;  %3902 = vmatmul.msk.bf16.gmra.mxu1 %vm676_vm0, %v5051_v23 }
 0x180   : > { %v3328_v28 = vadd.f32 %v5868_v61, %v3228_v27  ;;  %4178 = vmatmul.msk.bf16.gmra.mxu2 %vm676_vm0, %v4521_v24  ;;  %4454 = vmatmul.msk.bf16.gmra.mxu3 %vm676_vm0, %v4575_v25  ;;  %v5496_v35 = vpop.eup %5495  ;;  %v5402_v25 = vld [vmem:[#allocation2 + $0xbc] sm:$0xff]  }
 0x182   : > { %5497 = vtanh.f32 %v3328_v28 }
 0x183   : > { %v2145_v30 = vpop.f32.mrf.mxu2  ;;  %v3019_v31 = vpop.f32.mrf.mxu3 }
 0x184   : > { %v882_v32 = vpop.f32.mrf.mxu0  ;;  %v1369_v33 = vpop.f32.mrf.mxu1  ;;  %v2355_v34 = vadd.f32 %v2145_v30, %v1368_v29  ;;  %v5054_v29 = vld [vmem:[#allocation2 + $0xa8] sm:$0xff]   ;;  %v4524_v30 = vld [vmem:[#allocation2 + $0xd0] sm:$0xff] }
 0x185   : > { %v1370_v39 = vadd.f32 %v1369_v33, %v882_v32 }
 0x186   : > { %v3229_v38 = vadd.f32 %v3019_v31, %v2355_v34  ;;  %v4578_v31 = vld [vmem:[#allocation2 + $0xe4] sm:$0xff] }
 0x188   : > { %v5498_v36 = vpop.eup %5497  ;;  %v3329_v49 = vadd.f32 %v5868_v61, %v3229_v38 }
 0x189   : > { %v4843_v37 = vpack.c.bf16 %v5498_v36, %v5496_v35 }
 0x18a   : > { %5499 = vtanh.f32 %v3329_v49 }
 0x18b   : > { %5089 = vst [vmem:[%s5699_s24 + $0x48] sm:$0xff] %v4843_v37   ;;  %v2147_v40 = vpop.f32.mrf.mxu2  ;;  %v3021_v41 = vpop.f32.mrf.mxu3 }
 0x18c   : > { %v2356_v43 = vadd.f32 %v2147_v40, %v1370_v39  ;;  %v885_v44 = vpop.f32.mrf.mxu0  ;;  %v1372_v45 = vpop.f32.mrf.mxu1 }
 0x18d   : > { %v1373_v52 = vadd.f32 %v1372_v45, %v885_v44 }
 0x18e   : > { %v3230_v50 = vadd.f32 %v3021_v41, %v2356_v43 }
 0x18f   : > { %3823 = vmatmul.msk.bf16.gmra.mxu0 %vm676_vm0, %v5398_v42  ;;  %3903 = vmatmul.msk.bf16.gmra.mxu1 %vm676_vm0, %v5052_v46 }
 0x190   : > { %v3330_v51 = vadd.f32 %v5868_v61, %v3230_v50  ;;  %4179 = vmatmul.msk.bf16.gmra.mxu2 %vm676_vm0, %v4522_v47  ;;  %4455 = vmatmul.msk.bf16.gmra.mxu3 %vm676_vm0, %v4576_v48  ;;  %v5500_v58 = vpop.eup %5499  ;;  %v5404_v48 = vld [vmem:[#allocation2 + $0xc4] sm:$0xff]  }
 0x192   : > { %5501 = vtanh.f32 %v3330_v51 }
 0x193   : > { %v2150_v53 = vpop.f32.mrf.mxu2  ;;  %v3024_v54 = vpop.f32.mrf.mxu3 }
 0x194   : > { %v887_v55 = vpop.f32.mrf.mxu0  ;;  %v1374_v56 = vpop.f32.mrf.mxu1  ;;  %v2357_v57 = vadd.f32 %v2150_v53, %v1373_v52  ;;  %v5055_v52 = vld [vmem:[#allocation2 + $0xb0] sm:$0xff]   ;;  %v4525_v53 = vld [vmem:[#allocation2 + $0xd8] sm:$0xff] }
 0x195   : > { %v1375_v63 = vadd.f32 %v1374_v56, %v887_v55 }
 0x196   : > { %v3231_v62 = vadd.f32 %v3024_v54, %v2357_v57  ;;  %v4579_v54 = vld [vmem:[#allocation2 + $0xec] sm:$0xff] }
 0x198   : > { %v5502_v59 = vpop.eup %5501  ;;  %v3331_v9 = vadd.f32 %v5868_v61, %v3231_v62 }
 0x199   : > { %v4848_v60 = vpack.c.bf16 %v5502_v59, %v5500_v58 }
 0x19a   : > { %5503 = vtanh.f32 %v3331_v9 }
 0x19b   : > { %5090 = vst [vmem:[%s5699_s24 + $0x50] sm:$0xff] %v4848_v60   ;;  %v2152_v0 = vpop.f32.mrf.mxu2  ;;  %v3026_v1 = vpop.f32.mrf.mxu3 }
 0x19c   : > { %v2358_v3 = vadd.f32 %v2152_v0, %v1375_v63  ;;  %v890_v4 = vpop.f32.mrf.mxu0  ;;  %v1377_v5 = vpop.f32.mrf.mxu1 }
 0x19d   : > { %v1378_v12 = vadd.f32 %v1377_v5, %v890_v4 }
 0x19e   : > { %v3232_v10 = vadd.f32 %v3026_v1, %v2358_v3 }
 0x19f   : > { %3824 = vmatmul.msk.bf16.gmra.mxu0 %vm676_vm0, %v5400_v2  ;;  %3904 = vmatmul.msk.bf16.gmra.mxu1 %vm676_vm0, %v5053_v6 }
 0x1a0   : > { %v3332_v11 = vadd.f32 %v5868_v61, %v3232_v10  ;;  %4180 = vmatmul.msk.bf16.gmra.mxu2 %vm676_vm0, %v4523_v7  ;;  %4456 = vmatmul.msk.bf16.gmra.mxu3 %vm676_vm0, %v4577_v8  ;;  %v5504_v18 = vpop.eup %5503  ;;  %v5406_v8 = vld [vmem:[#allocation2 + $0xcc] sm:$0xff]  }
 0x1a2   : > { %5505 = vtanh.f32 %v3332_v11 }
 0x1a3   : > { %v2155_v13 = vpop.f32.mrf.mxu2  ;;  %v3029_v14 = vpop.f32.mrf.mxu3 }
 0x1a4   : > { %v892_v15 = vpop.f32.mrf.mxu0  ;;  %v1379_v16 = vpop.f32.mrf.mxu1  ;;  %v2359_v17 = vadd.f32 %v2155_v13, %v1378_v12  ;;  %v5056_v12 = vld [vmem:[#allocation2 + $0xb8] sm:$0xff]   ;;  %v4526_v13 = vld [vmem:[#allocation2 + $0xe0] sm:$0xff] }
 0x1a5   : > { %v1380_v22 = vadd.f32 %v1379_v16, %v892_v15 }
 0x1a6   : > { %v3233_v21 = vadd.f32 %v3029_v14, %v2359_v17  ;;  %v4580_v14 = vld [vmem:[#allocation2 + $0xf4] sm:$0xff] }
 0x1a8   : > { %v5506_v19 = vpop.eup %5505  ;;  %v3333_v32 = vadd.f32 %v5868_v61, %v3233_v21 }
 0x1a9   : > { %v4853_v20 = vpack.c.bf16 %v5506_v19, %v5504_v18 }
 0x1aa   : > { %5507 = vtanh.f32 %v3333_v32 }
 0x1ab   : > { %5091 = vst [vmem:[%s5699_s24 + $0x58] sm:$0xff] %v4853_v20   ;;  %v2157_v23 = vpop.f32.mrf.mxu2  ;;  %v3031_v24 = vpop.f32.mrf.mxu3 }
 0x1ac   : > { %v2360_v26 = vadd.f32 %v2157_v23, %v1380_v22  ;;  %v895_v27 = vpop.f32.mrf.mxu0  ;;  %v1382_v28 = vpop.f32.mrf.mxu1 }
 0x1ad   : > { %v1383_v35 = vadd.f32 %v1382_v28, %v895_v27 }
 0x1ae   : > { %v3234_v33 = vadd.f32 %v3031_v24, %v2360_v26 }
 0x1af   : > { %3825 = vmatmul.msk.bf16.gmra.mxu0 %vm676_vm0, %v5402_v25  ;;  %3905 = vmatmul.msk.bf16.gmra.mxu1 %vm676_vm0, %v5054_v29 }
 0x1b0   : > { %v3334_v34 = vadd.f32 %v5868_v61, %v3234_v33  ;;  %4181 = vmatmul.msk.bf16.gmra.mxu2 %vm676_vm0, %v4524_v30  ;;  %4457 = vmatmul.msk.bf16.gmra.mxu3 %vm676_vm0, %v4578_v31  ;;  %v5508_v41 = vpop.eup %5507  ;;  %v5408_v31 = vld [vmem:[#allocation2 + $0xd4] sm:$0xff]  }
 0x1b2   : > { %5509 = vtanh.f32 %v3334_v34 }
 0x1b3   : > { %v2160_v36 = vpop.f32.mrf.mxu2  ;;  %v3034_v37 = vpop.f32.mrf.mxu3 }
 0x1b4   : > { %v897_v38 = vpop.f32.mrf.mxu0  ;;  %v1384_v39 = vpop.f32.mrf.mxu1  ;;  %v2361_v40 = vadd.f32 %v2160_v36, %v1383_v35  ;;  %v5057_v35 = vld [vmem:[#allocation2 + $0xc0] sm:$0xff]   ;;  %v4527_v36 = vld [vmem:[#allocation2 + $0xe8] sm:$0xff] }
 0x1b5   : > { %v1385_v45 = vadd.f32 %v1384_v39, %v897_v38 }
 0x1b6   : > { %v3235_v44 = vadd.f32 %v3034_v37, %v2361_v40  ;;  %v4581_v37 = vld [vmem:[#allocation2 + $0xfc] sm:$0xff] }
 0x1b8   : > { %v5510_v42 = vpop.eup %5509  ;;  %v3335_v55 = vadd.f32 %v5868_v61, %v3235_v44 }
 0x1b9   : > { %v4858_v43 = vpack.c.bf16 %v5510_v42, %v5508_v41 }
 0x1ba   : > { %5511 = vtanh.f32 %v3335_v55 }
 0x1bb   : > { %5092 = vst [vmem:[%s5699_s24 + $0x60] sm:$0xff] %v4858_v43   ;;  %v2162_v46 = vpop.f32.mrf.mxu2  ;;  %v3036_v47 = vpop.f32.mrf.mxu3 }
 0x1bc   : > { %v2362_v49 = vadd.f32 %v2162_v46, %v1385_v45  ;;  %v900_v50 = vpop.f32.mrf.mxu0  ;;  %v1387_v51 = vpop.f32.mrf.mxu1 }
 0x1bd   : > { %v1388_v58 = vadd.f32 %v1387_v51, %v900_v50 }
 0x1be   : > { %v3236_v56 = vadd.f32 %v3036_v47, %v2362_v49 }
 0x1bf   : > { %3826 = vmatmul.msk.bf16.gmra.mxu0 %vm676_vm0, %v5404_v48  ;;  %3906 = vmatmul.msk.bf16.gmra.mxu1 %vm676_vm0, %v5055_v52 }
 0x1c0   : > { %v3336_v57 = vadd.f32 %v5868_v61, %v3236_v56  ;;  %4182 = vmatmul.msk.bf16.gmra.mxu2 %vm676_vm0, %v4525_v53  ;;  %4458 = vmatmul.msk.bf16.gmra.mxu3 %vm676_vm0, %v4579_v54  ;;  %v5512_v1 = vpop.eup %5511  ;;  %v5410_v54 = vld [vmem:[#allocation2 + $0xdc] sm:$0xff]  }
 0x1c2   : > { %5513 = vtanh.f32 %v3336_v57 }
 0x1c3   : > { %v2165_v59 = vpop.f32.mrf.mxu2  ;;  %v3039_v60 = vpop.f32.mrf.mxu3 }
 0x1c4   : > { %v902_v62 = vpop.f32.mrf.mxu0  ;;  %v1389_v63 = vpop.f32.mrf.mxu1  ;;  %v2363_v0 = vadd.f32 %v2165_v59, %v1388_v58  ;;  %v5058_v58 = vld [vmem:[#allocation2 + $0xc8] sm:$0xff]   ;;  %v4528_v59 = vld [vmem:[#allocation2 + $0xf0] sm:$0xff] }
 0x1c5   : > { %v1390_v5 = vadd.f32 %v1389_v63, %v902_v62 }
 0x1c6   : > { %v3237_v4 = vadd.f32 %v3039_v60, %v2363_v0  ;;  %v4582_v60 = vld [vmem:[#allocation2 + $0x104] sm:$0xff] }
 0x1c8   : > { %v5514_v2 = vpop.eup %5513  ;;  %v3337_v15 = vadd.f32 %v5868_v61, %v3237_v4 }
 0x1c9   : > { %v4863_v3 = vpack.c.bf16 %v5514_v2, %v5512_v1 }
 0x1ca   : > { %5515 = vtanh.f32 %v3337_v15 }
 0x1cb   : > { %5093 = vst [vmem:[%s5699_s24 + $0x68] sm:$0xff] %v4863_v3   ;;  %v2167_v6 = vpop.f32.mrf.mxu2  ;;  %v3041_v7 = vpop.f32.mrf.mxu3 }
 0x1cc   : > { %v2364_v9 = vadd.f32 %v2167_v6, %v1390_v5  ;;  %v905_v10 = vpop.f32.mrf.mxu0  ;;  %v1392_v11 = vpop.f32.mrf.mxu1 }
 0x1cd   : > { %v1393_v18 = vadd.f32 %v1392_v11, %v905_v10 }
 0x1ce   : > { %v3238_v16 = vadd.f32 %v3041_v7, %v2364_v9 }
 0x1cf   : > { %3827 = vmatmul.msk.bf16.gmra.mxu0 %vm676_vm0, %v5406_v8  ;;  %3907 = vmatmul.msk.bf16.gmra.mxu1 %vm676_vm0, %v5056_v12 }
 0x1d0   : > { %v3338_v17 = vadd.f32 %v5868_v61, %v3238_v16  ;;  %4183 = vmatmul.msk.bf16.gmra.mxu2 %vm676_vm0, %v4526_v13  ;;  %4459 = vmatmul.msk.bf16.gmra.mxu3 %vm676_vm0, %v4580_v14  ;;  %v5516_v24 = vpop.eup %5515  ;;  %v5412_v13 = vld [vmem:[#allocation2 + $0xe4] sm:$0xff]  }
 0x1d2   : > { %5517 = vtanh.f32 %v3338_v17  ;;  %v5059_v17 = vld [vmem:[#allocation2 + $0xd0] sm:$0xff]  }
 0x1d3   : > { %v2170_v19 = vpop.f32.mrf.mxu2  ;;  %v3044_v20 = vpop.f32.mrf.mxu3 }
 0x1d4   : > { %v907_v21 = vpop.f32.mrf.mxu0  ;;  %v1394_v22 = vpop.f32.mrf.mxu1  ;;  %v2365_v23 = vadd.f32 %v2170_v19, %v1393_v18  ;;  %v4529_v18 = vld [vmem:[#allocation2 + $0xf8] sm:$0xff]  ;;  %v4583_v19 = vld [vmem:[#allocation2 + $0x10c] sm:$0xff] }
 0x1d5   : > { %v1395_v28 = vadd.f32 %v1394_v22, %v907_v21 }
 0x1d6   : > { %v3239_v27 = vadd.f32 %v3044_v20, %v2365_v23  ;;  %v5992_v20 = vld [vmem:[%s6185_s2] ss:$0 sm:$0xff] }
 0x1d8   : > { %v5518_v25 = vpop.eup %5517  ;;  %v3339_v38 = vadd.f32 %v5868_v61, %v3239_v27 }
 0x1d9   : > { %v4868_v26 = vpack.c.bf16 %v5518_v25, %v5516_v24 }
 0x1da   : > { %5519 = vtanh.f32 %v3339_v38 }
 0x1db   : > { %5094 = vst [vmem:[%s5699_s24 + $0x70] sm:$0xff] %v4868_v26   ;;  %v2172_v29 = vpop.f32.mrf.mxu2  ;;  %v3046_v30 = vpop.f32.mrf.mxu3 }
 0x1dc   : > { %v2366_v32 = vadd.f32 %v2172_v29, %v1395_v28  ;;  %v910_v33 = vpop.f32.mrf.mxu0  ;;  %v1397_v34 = vpop.f32.mrf.mxu1 }
 0x1dd   : > { %v1398_v41 = vadd.f32 %v1397_v34, %v910_v33 }
 0x1de   : > { %v3240_v39 = vadd.f32 %v3046_v30, %v2366_v32 }
 0x1df   : > { %3828 = vmatmul.msk.bf16.gmra.mxu0 %vm676_vm0, %v5408_v31  ;;  %3908 = vmatmul.msk.bf16.gmra.mxu1 %vm676_vm0, %v5057_v35 }
 0x1e0   : > { %v3340_v40 = vadd.f32 %v5868_v61, %v3240_v39  ;;  %4184 = vmatmul.msk.bf16.gmra.mxu2 %vm676_vm0, %v4527_v36  ;;  %4460 = vmatmul.msk.bf16.gmra.mxu3 %vm676_vm0, %v4581_v37  ;;  %v5520_v47 = vpop.eup %5519  ;;  %v5414_v37 = vld [vmem:[#allocation2 + $0xec] sm:$0xff]  }
 0x1e2   : > { %5521 = vtanh.f32 %v3340_v40 }
 0x1e3   : > { %v2175_v42 = vpop.f32.mrf.mxu2  ;;  %v3049_v43 = vpop.f32.mrf.mxu3 }
 0x1e4   : > { %v912_v44 = vpop.f32.mrf.mxu0  ;;  %v1399_v45 = vpop.f32.mrf.mxu1  ;;  %v2367_v46 = vadd.f32 %v2175_v42, %v1398_v41  ;;  %v5060_v41 = vld [vmem:[#allocation2 + $0xd8] sm:$0xff]   ;;  %v4530_v42 = vld [vmem:[#allocation2 + $0x100] sm:$0xff] }
 0x1e5   : > { %v1400_v51 = vadd.f32 %v1399_v45, %v912_v44 }
 0x1e6   : > { %v3241_v50 = vadd.f32 %v3049_v43, %v2367_v46  ;;  %v4584_v43 = vld [vmem:[#allocation2 + $0x114] sm:$0xff] }
 0x1e8   : > { %v5522_v48 = vpop.eup %5521  ;;  %v3341_v62 = vadd.f32 %v5868_v61, %v3241_v50 }
 0x1e9   : > { %v4873_v49 = vpack.c.bf16 %v5522_v48, %v5520_v47 }
 0x1ea   : > { %5523 = vtanh.f32 %v3341_v62 }
 0x1eb   : > { %5095 = vst [vmem:[%s5699_s24 + $0x78] sm:$0xff] %v4873_v49   ;;  %v2177_v52 = vpop.f32.mrf.mxu2  ;;  %v3051_v53 = vpop.f32.mrf.mxu3 }
 0x1ec   : > { %v2368_v55 = vadd.f32 %v2177_v52, %v1400_v51  ;;  %v915_v56 = vpop.f32.mrf.mxu0  ;;  %v1402_v57 = vpop.f32.mrf.mxu1 }
 0x1ed   : > { %v1403_v1 = vadd.f32 %v1402_v57, %v915_v56 }
 0x1ee   : > { %v3242_v63 = vadd.f32 %v3051_v53, %v2368_v55 }
 0x1ef   : > { %3829 = vmatmul.msk.bf16.gmra.mxu0 %vm676_vm0, %v5410_v54  ;;  %3909 = vmatmul.msk.bf16.gmra.mxu1 %vm676_vm0, %v5058_v58 }
 0x1f0   : > { %v3342_v0 = vadd.f32 %v5868_v61, %v3242_v63  ;;  %4185 = vmatmul.msk.bf16.gmra.mxu2 %vm676_vm0, %v4528_v59  ;;  %4461 = vmatmul.msk.bf16.gmra.mxu3 %vm676_vm0, %v4582_v60  ;;  %v5524_v7 = vpop.eup %5523  ;;  %v5416_v60 = vld [vmem:[#allocation2 + $0xf4] sm:$0xff]  }
 0x1f2   : > { %5525 = vtanh.f32 %v3342_v0 }
 0x1f3   : > { %v2180_v2 = vpop.f32.mrf.mxu2  ;;  %v3054_v3 = vpop.f32.mrf.mxu3 }
 0x1f4   : > { %v917_v4 = vpop.f32.mrf.mxu0  ;;  %v1404_v5 = vpop.f32.mrf.mxu1  ;;  %v2369_v6 = vadd.f32 %v2180_v2, %v1403_v1  ;;  %v5061_v1 = vld [vmem:[#allocation2 + $0xe0] sm:$0xff]   ;;  %v4531_v2 = vld [vmem:[#allocation2 + $0x108] sm:$0xff] }
 0x1f5   : > { %v1405_v11 = vadd.f32 %v1404_v5, %v917_v4 }
 0x1f6   : > { %v3243_v10 = vadd.f32 %v3054_v3, %v2369_v6  ;;  %v4585_v3 = vld [vmem:[#allocation2 + $0x11c] sm:$0xff] }
 0x1f8   : > { %v5526_v8 = vpop.eup %5525  ;;  %v3343_v21 = vadd.f32 %v5992_v20, %v3243_v10 }
 0x1f9   : > { %v4878_v9 = vpack.c.bf16 %v5526_v8, %v5524_v7 }
 0x1fa   : > { %5527 = vtanh.f32 %v3343_v21 }
 0x1fb   : > { %5096 = vst [vmem:[%s5699_s24 + $0x80] sm:$0xff] %v4878_v9   ;;  %v2182_v61 = vpop.f32.mrf.mxu2  ;;  %v3056_v12 = vpop.f32.mrf.mxu3 }
 0x1fc   : > { %v2370_v14 = vadd.f32 %v2182_v61, %v1405_v11  ;;  %v920_v15 = vpop.f32.mrf.mxu0  ;;  %v1407_v16 = vpop.f32.mrf.mxu1 }
 0x1fd   : > { %v1408_v24 = vadd.f32 %v1407_v16, %v920_v15 }
 0x1fe   : > { %v3244_v22 = vadd.f32 %v3056_v12, %v2370_v14 }
 0x1ff   : > { %3830 = vmatmul.msk.bf16.gmra.mxu0 %vm676_vm0, %v5412_v13  ;;  %3910 = vmatmul.msk.bf16.gmra.mxu1 %vm676_vm0, %v5059_v17 }
 0x200   : > { %v3344_v23 = vadd.f32 %v5992_v20, %v3244_v22  ;;  %4186 = vmatmul.msk.bf16.gmra.mxu2 %vm676_vm0, %v4529_v18  ;;  %4462 = vmatmul.msk.bf16.gmra.mxu3 %vm676_vm0, %v4583_v19  ;;  %v5528_v30 = vpop.eup %5527  ;;  %v5418_v19 = vld [vmem:[#allocation2 + $0xfc] sm:$0xff]  }
 0x202   : > { %5529 = vtanh.f32 %v3344_v23 }
 0x203   : > { %v2185_v25 = vpop.f32.mrf.mxu2  ;;  %v3059_v26 = vpop.f32.mrf.mxu3 }
 0x204   : > { %v922_v27 = vpop.f32.mrf.mxu0  ;;  %v1409_v28 = vpop.f32.mrf.mxu1  ;;  %v2371_v29 = vadd.f32 %v2185_v25, %v1408_v24  ;;  %v5062_v24 = vld [vmem:[#allocation2 + $0xe8] sm:$0xff]   ;;  %v4532_v25 = vld [vmem:[#allocation2 + $0x110] sm:$0xff] }
 0x205   : > { %v1410_v34 = vadd.f32 %v1409_v28, %v922_v27 }
 0x206   : > { %v3245_v33 = vadd.f32 %v3059_v26, %v2371_v29  ;;  %v4586_v26 = vld [vmem:[#allocation2 + $0x124] sm:$0xff] }
 0x208   : > { %v5530_v31 = vpop.eup %5529  ;;  %v3345_v44 = vadd.f32 %v5992_v20, %v3245_v33 }
 0x209   : > { %v4883_v32 = vpack.c.bf16 %v5530_v31, %v5528_v30 }
 0x20a   : > { %5531 = vtanh.f32 %v3345_v44 }
 0x20b   : > { %5097 = vst [vmem:[%s5699_s24 + $0x88] sm:$0xff] %v4883_v32   ;;  %v2187_v35 = vpop.f32.mrf.mxu2  ;;  %v3061_v36 = vpop.f32.mrf.mxu3 }
 0x20c   : > { %v2372_v38 = vadd.f32 %v2187_v35, %v1410_v34  ;;  %v925_v39 = vpop.f32.mrf.mxu0  ;;  %v1412_v40 = vpop.f32.mrf.mxu1 }
 0x20d   : > { %v1413_v47 = vadd.f32 %v1412_v40, %v925_v39 }
 0x20e   : > { %v3246_v45 = vadd.f32 %v3061_v36, %v2372_v38 }
 0x20f   : > { %3831 = vmatmul.msk.bf16.gmra.mxu0 %vm676_vm0, %v5414_v37  ;;  %3911 = vmatmul.msk.bf16.gmra.mxu1 %vm676_vm0, %v5060_v41 }
 0x210   : > { %v3346_v46 = vadd.f32 %v5992_v20, %v3246_v45  ;;  %4187 = vmatmul.msk.bf16.gmra.mxu2 %vm676_vm0, %v4530_v42  ;;  %4463 = vmatmul.msk.bf16.gmra.mxu3 %vm676_vm0, %v4584_v43  ;;  %v5532_v53 = vpop.eup %5531  ;;  %v5420_v43 = vld [vmem:[#allocation2 + $0x104] sm:$0xff]  }
 0x212   : > { %5533 = vtanh.f32 %v3346_v46 }
 0x213   : > { %v2190_v48 = vpop.f32.mrf.mxu2  ;;  %v3064_v49 = vpop.f32.mrf.mxu3 }
 0x214   : > { %v927_v50 = vpop.f32.mrf.mxu0  ;;  %v1414_v51 = vpop.f32.mrf.mxu1  ;;  %v2373_v52 = vadd.f32 %v2190_v48, %v1413_v47  ;;  %v5063_v47 = vld [vmem:[#allocation2 + $0xf0] sm:$0xff]   ;;  %v4533_v48 = vld [vmem:[#allocation2 + $0x118] sm:$0xff] }
 0x215   : > { %v1415_v57 = vadd.f32 %v1414_v51, %v927_v50 }
 0x216   : > { %v3247_v56 = vadd.f32 %v3064_v49, %v2373_v52  ;;  %v4587_v49 = vld [vmem:[#allocation2 + $0x12c] sm:$0xff] }
 0x218   : > { %v5534_v54 = vpop.eup %5533  ;;  %v3347_v4 = vadd.f32 %v5992_v20, %v3247_v56 }
 0x219   : > { %v4888_v55 = vpack.c.bf16 %v5534_v54, %v5532_v53 }
 0x21a   : > { %5535 = vtanh.f32 %v3347_v4 }
 0x21b   : > { %5098 = vst [vmem:[%s5699_s24 + $0x90] sm:$0xff] %v4888_v55   ;;  %v2192_v58 = vpop.f32.mrf.mxu2  ;;  %v3066_v59 = vpop.f32.mrf.mxu3 }
 0x21c   : > { %v2374_v62 = vadd.f32 %v2192_v58, %v1415_v57  ;;  %v930_v63 = vpop.f32.mrf.mxu0  ;;  %v1417_v0 = vpop.f32.mrf.mxu1 }
 0x21d   : > { %v1418_v7 = vadd.f32 %v1417_v0, %v930_v63 }
 0x21e   : > { %v3248_v5 = vadd.f32 %v3066_v59, %v2374_v62 }
 0x21f   : > { %3832 = vmatmul.msk.bf16.gmra.mxu0 %vm676_vm0, %v5416_v60  ;;  %3912 = vmatmul.msk.bf16.gmra.mxu1 %vm676_vm0, %v5061_v1 }
 0x220   : > { %v3348_v6 = vadd.f32 %v5992_v20, %v3248_v5  ;;  %4188 = vmatmul.msk.bf16.gmra.mxu2 %vm676_vm0, %v4531_v2  ;;  %4464 = vmatmul.msk.bf16.gmra.mxu3 %vm676_vm0, %v4585_v3  ;;  %v5536_v12 = vpop.eup %5535  ;;  %v5422_v3 = vld [vmem:[#allocation2 + $0x10c] sm:$0xff]  }
 0x222   : > { %5537 = vtanh.f32 %v3348_v6 }
 0x223   : > { %v2195_v8 = vpop.f32.mrf.mxu2  ;;  %v3069_v9 = vpop.f32.mrf.mxu3 }
 0x224   : > { %v932_v10 = vpop.f32.mrf.mxu0  ;;  %v1419_v11 = vpop.f32.mrf.mxu1  ;;  %v2375_v61 = vadd.f32 %v2195_v8, %v1418_v7  ;;  %v5064_v7 = vld [vmem:[#allocation2 + $0xf8] sm:$0xff]   ;;  %v4534_v8 = vld [vmem:[#allocation2 + $0x120] sm:$0xff] }
 0x225   : > { %v1420_v16 = vadd.f32 %v1419_v11, %v932_v10 }
 0x226   : > { %v3249_v15 = vadd.f32 %v3069_v9, %v2375_v61  ;;  %v4588_v9 = vld [vmem:[#allocation2 + $0x134] sm:$0xff] }
 0x228   : > { %v5538_v13 = vpop.eup %5537  ;;  %v3349_v27 = vadd.f32 %v5992_v20, %v3249_v15 }
 0x229   : > { %v4893_v14 = vpack.c.bf16 %v5538_v13, %v5536_v12 }
 0x22a   : > { %5539 = vtanh.f32 %v3349_v27 }
 0x22b   : > { %5099 = vst [vmem:[%s5699_s24 + $0x98] sm:$0xff] %v4893_v14   ;;  %v2197_v17 = vpop.f32.mrf.mxu2  ;;  %v3071_v18 = vpop.f32.mrf.mxu3 }
 0x22c   : > { %v2376_v21 = vadd.f32 %v2197_v17, %v1420_v16  ;;  %v935_v22 = vpop.f32.mrf.mxu0  ;;  %v1422_v23 = vpop.f32.mrf.mxu1 }
 0x22d   : > { %v1423_v30 = vadd.f32 %v1422_v23, %v935_v22 }
 0x22e   : > { %v3250_v28 = vadd.f32 %v3071_v18, %v2376_v21 }
 0x22f   : > { %3833 = vmatmul.msk.bf16.gmra.mxu0 %vm676_vm0, %v5418_v19  ;;  %3913 = vmatmul.msk.bf16.gmra.mxu1 %vm676_vm0, %v5062_v24 }
 0x230   : > { %v3350_v29 = vadd.f32 %v5992_v20, %v3250_v28  ;;  %4189 = vmatmul.msk.bf16.gmra.mxu2 %vm676_vm0, %v4532_v25  ;;  %4465 = vmatmul.msk.bf16.gmra.mxu3 %vm676_vm0, %v4586_v26  ;;  %v5540_v36 = vpop.eup %5539  ;;  %v5424_v26 = vld [vmem:[#allocation2 + $0x114] sm:$0xff]  }
 0x232   : > { %5541 = vtanh.f32 %v3350_v29 }
 0x233   : > { %v2200_v31 = vpop.f32.mrf.mxu2  ;;  %v3074_v32 = vpop.f32.mrf.mxu3 }
 0x234   : > { %v937_v33 = vpop.f32.mrf.mxu0  ;;  %v1424_v34 = vpop.f32.mrf.mxu1  ;;  %v2377_v35 = vadd.f32 %v2200_v31, %v1423_v30  ;;  %v5065_v30 = vld [vmem:[#allocation2 + $0x100] sm:$0xff]   ;;  %v4535_v31 = vld [vmem:[#allocation2 + $0x128] sm:$0xff] }
 0x235   : > { %v1425_v40 = vadd.f32 %v1424_v34, %v937_v33 }
 0x236   : > { %v3251_v39 = vadd.f32 %v3074_v32, %v2377_v35  ;;  %v4589_v32 = vld [vmem:[#allocation2 + $0x13c] sm:$0xff] }
 0x238   : > { %v5542_v37 = vpop.eup %5541  ;;  %v3351_v50 = vadd.f32 %v5992_v20, %v3251_v39 }
 0x239   : > { %v4898_v38 = vpack.c.bf16 %v5542_v37, %v5540_v36 }
 0x23a   : > { %5543 = vtanh.f32 %v3351_v50 }
 0x23b   : > { %5100 = vst [vmem:[%s5699_s24 + $0xa0] sm:$0xff] %v4898_v38   ;;  %v2202_v41 = vpop.f32.mrf.mxu2  ;;  %v3076_v42 = vpop.f32.mrf.mxu3 }
 0x23c   : > { %v2378_v44 = vadd.f32 %v2202_v41, %v1425_v40  ;;  %v940_v45 = vpop.f32.mrf.mxu0  ;;  %v1427_v46 = vpop.f32.mrf.mxu1 }
 0x23d   : > { %v1428_v53 = vadd.f32 %v1427_v46, %v940_v45 }
 0x23e   : > { %v3252_v51 = vadd.f32 %v3076_v42, %v2378_v44 }
 0x23f   : > { %3834 = vmatmul.msk.bf16.gmra.mxu0 %vm676_vm0, %v5420_v43  ;;  %3914 = vmatmul.msk.bf16.gmra.mxu1 %vm676_vm0, %v5063_v47 }
 0x240   : > { %v3352_v52 = vadd.f32 %v5992_v20, %v3252_v51  ;;  %4190 = vmatmul.msk.bf16.gmra.mxu2 %vm676_vm0, %v4533_v48  ;;  %4466 = vmatmul.msk.bf16.gmra.mxu3 %vm676_vm0, %v4587_v49  ;;  %v5544_v59 = vpop.eup %5543  ;;  %v5426_v49 = vld [vmem:[#allocation2 + $0x11c] sm:$0xff]  }
 0x242   : > { %5545 = vtanh.f32 %v3352_v52 }
 0x243   : > { %v2205_v54 = vpop.f32.mrf.mxu2  ;;  %v3079_v55 = vpop.f32.mrf.mxu3 }
 0x244   : > { %v942_v56 = vpop.f32.mrf.mxu0  ;;  %v1429_v57 = vpop.f32.mrf.mxu1  ;;  %v2379_v58 = vadd.f32 %v2205_v54, %v1428_v53  ;;  %v5066_v53 = vld [vmem:[#allocation2 + $0x108] sm:$0xff]   ;;  %v4536_v54 = vld [vmem:[#allocation2 + $0x130] sm:$0xff] }
 0x245   : > { %v1430_v0 = vadd.f32 %v1429_v57, %v942_v56 }
 0x246   : > { %v3253_v63 = vadd.f32 %v3079_v55, %v2379_v58  ;;  %v4590_v55 = vld [vmem:[#allocation2 + $0x144] sm:$0xff] }
 0x248   : > { %v5546_v60 = vpop.eup %5545  ;;  %v3353_v10 = vadd.f32 %v5992_v20, %v3253_v63 }
 0x249   : > { %v4903_v62 = vpack.c.bf16 %v5546_v60, %v5544_v59 }
 0x24a   : > { %5547 = vtanh.f32 %v3353_v10 }
 0x24b   : > { %5101 = vst [vmem:[%s5699_s24 + $0xa8] sm:$0xff] %v4903_v62   ;;  %v2207_v1 = vpop.f32.mrf.mxu2  ;;  %v3081_v2 = vpop.f32.mrf.mxu3 }
 0x24c   : > { %v2380_v4 = vadd.f32 %v2207_v1, %v1430_v0  ;;  %v945_v5 = vpop.f32.mrf.mxu0  ;;  %v1432_v6 = vpop.f32.mrf.mxu1 }
 0x24d   : > { %v1433_v12 = vadd.f32 %v1432_v6, %v945_v5 }
 0x24e   : > { %v3254_v11 = vadd.f32 %v3081_v2, %v2380_v4 }
 0x24f   : > { %3835 = vmatmul.msk.bf16.gmra.mxu0 %vm676_vm0, %v5422_v3  ;;  %3915 = vmatmul.msk.bf16.gmra.mxu1 %vm676_vm0, %v5064_v7 }
 0x250   : > { %v3354_v61 = vadd.f32 %v5992_v20, %v3254_v11  ;;  %4191 = vmatmul.msk.bf16.gmra.mxu2 %vm676_vm0, %v4534_v8  ;;  %4467 = vmatmul.msk.bf16.gmra.mxu3 %vm676_vm0, %v4588_v9  ;;  %v5548_v18 = vpop.eup %5547  ;;  %v5428_v9 = vld [vmem:[#allocation2 + $0x124] sm:$0xff]  }
 0x252   : > { %5549 = vtanh.f32 %v3354_v61 }
 0x253   : > { %v2210_v13 = vpop.f32.mrf.mxu2  ;;  %v3084_v14 = vpop.f32.mrf.mxu3 }
 0x254   : > { %v947_v15 = vpop.f32.mrf.mxu0  ;;  %v1434_v16 = vpop.f32.mrf.mxu1  ;;  %v2381_v17 = vadd.f32 %v2210_v13, %v1433_v12  ;;  %v5067_v12 = vld [vmem:[#allocation2 + $0x110] sm:$0xff]   ;;  %v4537_v13 = vld [vmem:[#allocation2 + $0x138] sm:$0xff] }
 0x255   : > { %v1435_v23 = vadd.f32 %v1434_v16, %v947_v15 }
 0x256   : > { %v3255_v22 = vadd.f32 %v3084_v14, %v2381_v17  ;;  %v4591_v14 = vld [vmem:[#allocation2 + $0x14c] sm:$0xff] }
 0x258   : > { %v5550_v19 = vpop.eup %5549  ;;  %v3355_v33 = vadd.f32 %v5992_v20, %v3255_v22 }
 0x259   : > { %v4908_v21 = vpack.c.bf16 %v5550_v19, %v5548_v18 }
 0x25a   : > { %5551 = vtanh.f32 %v3355_v33 }
 0x25b   : > { %5102 = vst [vmem:[%s5699_s24 + $0xb0] sm:$0xff] %v4908_v21   ;;  %v2212_v24 = vpop.f32.mrf.mxu2  ;;  %v3086_v25 = vpop.f32.mrf.mxu3 }
 0x25c   : > { %v2382_v27 = vadd.f32 %v2212_v24, %v1435_v23  ;;  %v950_v28 = vpop.f32.mrf.mxu0  ;;  %v1437_v29 = vpop.f32.mrf.mxu1 }
 0x25d   : > { %v1438_v36 = vadd.f32 %v1437_v29, %v950_v28 }
 0x25e   : > { %v3256_v34 = vadd.f32 %v3086_v25, %v2382_v27 }
 0x25f   : > { %3836 = vmatmul.msk.bf16.gmra.mxu0 %vm676_vm0, %v5424_v26  ;;  %3916 = vmatmul.msk.bf16.gmra.mxu1 %vm676_vm0, %v5065_v30 }
 0x260   : > { %v3356_v35 = vadd.f32 %v5992_v20, %v3256_v34  ;;  %4192 = vmatmul.msk.bf16.gmra.mxu2 %vm676_vm0, %v4535_v31  ;;  %4468 = vmatmul.msk.bf16.gmra.mxu3 %vm676_vm0, %v4589_v32  ;;  %v5552_v42 = vpop.eup %5551  ;;  %v5430_v32 = vld [vmem:[#allocation2 + $0x12c] sm:$0xff]  }
 0x262   : > { %5553 = vtanh.f32 %v3356_v35 }
 0x263   : > { %v2215_v37 = vpop.f32.mrf.mxu2  ;;  %v3089_v38 = vpop.f32.mrf.mxu3 }
 0x264   : > { %v952_v39 = vpop.f32.mrf.mxu0  ;;  %v1439_v40 = vpop.f32.mrf.mxu1  ;;  %v2383_v41 = vadd.f32 %v2215_v37, %v1438_v36  ;;  %v5068_v36 = vld [vmem:[#allocation2 + $0x118] sm:$0xff]   ;;  %v4538_v37 = vld [vmem:[#allocation2 + $0x140] sm:$0xff] }
 0x265   : > { %v1440_v46 = vadd.f32 %v1439_v40, %v952_v39 }
 0x266   : > { %v3257_v45 = vadd.f32 %v3089_v38, %v2383_v41  ;;  %v4592_v38 = vld [vmem:[#allocation2 + $0x154] sm:$0xff] }
 0x268   : > { %v5554_v43 = vpop.eup %5553  ;;  %v3357_v56 = vadd.f32 %v5992_v20, %v3257_v45 }
 0x269   : > { %v4913_v44 = vpack.c.bf16 %v5554_v43, %v5552_v42 }
 0x26a   : > { %5555 = vtanh.f32 %v3357_v56 }
 0x26b   : > { %5103 = vst [vmem:[%s5699_s24 + $0xb8] sm:$0xff] %v4913_v44   ;;  %v2217_v47 = vpop.f32.mrf.mxu2  ;;  %v3091_v48 = vpop.f32.mrf.mxu3 }
 0x26c   : > { %v2384_v50 = vadd.f32 %v2217_v47, %v1440_v46  ;;  %v955_v51 = vpop.f32.mrf.mxu0  ;;  %v1442_v52 = vpop.f32.mrf.mxu1 }
 0x26d   : > { %v1443_v59 = vadd.f32 %v1442_v52, %v955_v51 }
 0x26e   : > { %v3258_v57 = vadd.f32 %v3091_v48, %v2384_v50 }
 0x26f   : > { %3837 = vmatmul.msk.bf16.gmra.mxu0 %vm676_vm0, %v5426_v49  ;;  %3917 = vmatmul.msk.bf16.gmra.mxu1 %vm676_vm0, %v5066_v53 }
 0x270   : > { %v3358_v58 = vadd.f32 %v5992_v20, %v3258_v57  ;;  %4193 = vmatmul.msk.bf16.gmra.mxu2 %vm676_vm0, %v4536_v54  ;;  %4469 = vmatmul.msk.bf16.gmra.mxu3 %vm676_vm0, %v4590_v55  ;;  %v5556_v2 = vpop.eup %5555  ;;  %v5432_v55 = vld [vmem:[#allocation2 + $0x134] sm:$0xff]  }
 0x272   : > { %5557 = vtanh.f32 %v3358_v58 }
 0x273   : > { %v2220_v60 = vpop.f32.mrf.mxu2  ;;  %v3094_v62 = vpop.f32.mrf.mxu3 }
 0x274   : > { %v957_v63 = vpop.f32.mrf.mxu0  ;;  %v1444_v0 = vpop.f32.mrf.mxu1  ;;  %v2385_v1 = vadd.f32 %v2220_v60, %v1443_v59  ;;  %v5069_v59 = vld [vmem:[#allocation2 + $0x120] sm:$0xff]   ;;  %v4539_v60 = vld [vmem:[#allocation2 + $0x148] sm:$0xff] }
 0x275   : > { %v1445_v6 = vadd.f32 %v1444_v0, %v957_v63 }
 0x276   : > { %v3259_v5 = vadd.f32 %v3094_v62, %v2385_v1  ;;  %v4593_v62 = vld [vmem:[#allocation2 + $0x15c] sm:$0xff] }
 0x278   : > { %v5558_v3 = vpop.eup %5557  ;;  %v3359_v15 = vadd.f32 %v5992_v20, %v3259_v5 }
 0x279   : > { %v4918_v4 = vpack.c.bf16 %v5558_v3, %v5556_v2 }
 0x27a   : > { %5559 = vtanh.f32 %v3359_v15 }
 0x27b   : > { %5104 = vst [vmem:[%s5699_s24 + $0xc0] sm:$0xff] %v4918_v4   ;;  %v2222_v7 = vpop.f32.mrf.mxu2  ;;  %v3096_v8 = vpop.f32.mrf.mxu3 }
 0x27c   : > { %v2386_v10 = vadd.f32 %v2222_v7, %v1445_v6  ;;  %v960_v11 = vpop.f32.mrf.mxu0  ;;  %v1447_v61 = vpop.f32.mrf.mxu1 }
 0x27d   : > { %v1448_v18 = vadd.f32 %v1447_v61, %v960_v11 }
 0x27e   : > { %v3260_v16 = vadd.f32 %v3096_v8, %v2386_v10 }
 0x27f   : > { %3838 = vmatmul.msk.bf16.gmra.mxu0 %vm676_vm0, %v5428_v9  ;;  %3918 = vmatmul.msk.bf16.gmra.mxu1 %vm676_vm0, %v5067_v12 }
 0x280   : > { %v3360_v17 = vadd.f32 %v5992_v20, %v3260_v16  ;;  %4194 = vmatmul.msk.bf16.gmra.mxu2 %vm676_vm0, %v4537_v13  ;;  %4470 = vmatmul.msk.bf16.gmra.mxu3 %vm676_vm0, %v4591_v14  ;;  %v5560_v25 = vpop.eup %5559  ;;  %v5434_v14 = vld [vmem:[#allocation2 + $0x13c] sm:$0xff]  }
 0x282   : > { %5561 = vtanh.f32 %v3360_v17 }
 0x283   : > { %v2225_v19 = vpop.f32.mrf.mxu2  ;;  %v3099_v21 = vpop.f32.mrf.mxu3 }
 0x284   : > { %v962_v22 = vpop.f32.mrf.mxu0  ;;  %v1449_v23 = vpop.f32.mrf.mxu1  ;;  %v2387_v24 = vadd.f32 %v2225_v19, %v1448_v18  ;;  %v5070_v18 = vld [vmem:[#allocation2 + $0x128] sm:$0xff]   ;;  %v4540_v19 = vld [vmem:[#allocation2 + $0x150] sm:$0xff] }
 0x285   : > { %v1450_v29 = vadd.f32 %v1449_v23, %v962_v22 }
 0x286   : > { %v3261_v28 = vadd.f32 %v3099_v21, %v2387_v24  ;;  %v4594_v21 = vld [vmem:[#allocation2 + $0x164] sm:$0xff] }
 0x288   : > { %v5562_v26 = vpop.eup %5561  ;;  %v3361_v39 = vadd.f32 %v5992_v20, %v3261_v28 }
 0x289   : > { %v4923_v27 = vpack.c.bf16 %v5562_v26, %v5560_v25 }
 0x28a   : > { %5563 = vtanh.f32 %v3361_v39 }
 0x28b   : > { %5105 = vst [vmem:[%s5699_s24 + $0xc8] sm:$0xff] %v4923_v27   ;;  %v2227_v30 = vpop.f32.mrf.mxu2  ;;  %v3101_v31 = vpop.f32.mrf.mxu3 }
 0x28c   : > { %v2388_v33 = vadd.f32 %v2227_v30, %v1450_v29  ;;  %v965_v34 = vpop.f32.mrf.mxu0  ;;  %v1452_v35 = vpop.f32.mrf.mxu1 }
 0x28d   : > { %v1453_v42 = vadd.f32 %v1452_v35, %v965_v34 }
 0x28e   : > { %v3262_v40 = vadd.f32 %v3101_v31, %v2388_v33 }
 0x28f   : > { %3839 = vmatmul.msk.bf16.gmra.mxu0 %vm676_vm0, %v5430_v32  ;;  %3919 = vmatmul.msk.bf16.gmra.mxu1 %vm676_vm0, %v5068_v36 }
 0x290   : > { %v3362_v41 = vadd.f32 %v5992_v20, %v3262_v40  ;;  %4195 = vmatmul.msk.bf16.gmra.mxu2 %vm676_vm0, %v4538_v37  ;;  %4471 = vmatmul.msk.bf16.gmra.mxu3 %vm676_vm0, %v4592_v38  ;;  %v5564_v48 = vpop.eup %5563  ;;  %v5436_v38 = vld [vmem:[#allocation2 + $0x144] sm:$0xff]  }
 0x292   : > { %5565 = vtanh.f32 %v3362_v41 }
 0x293   : > { %v2230_v43 = vpop.f32.mrf.mxu2  ;;  %v3104_v44 = vpop.f32.mrf.mxu3 }
 0x294   : > { %v967_v45 = vpop.f32.mrf.mxu0  ;;  %v1454_v46 = vpop.f32.mrf.mxu1  ;;  %v2389_v47 = vadd.f32 %v2230_v43, %v1453_v42  ;;  %v5071_v42 = vld [vmem:[#allocation2 + $0x130] sm:$0xff]   ;;  %v4541_v43 = vld [vmem:[#allocation2 + $0x158] sm:$0xff] }
 0x295   : > { %v1455_v52 = vadd.f32 %v1454_v46, %v967_v45 }
 0x296   : > { %v3263_v51 = vadd.f32 %v3104_v44, %v2389_v47  ;;  %v4595_v44 = vld [vmem:[#allocation2 + $0x16c] sm:$0xff] }
 0x298   : > { %v5566_v49 = vpop.eup %5565  ;;  %v3363_v63 = vadd.f32 %v5992_v20, %v3263_v51 }
 0x299   : > { %v4928_v50 = vpack.c.bf16 %v5566_v49, %v5564_v48 }
 0x29a   : > { %5567 = vtanh.f32 %v3363_v63 }
 0x29b   : > { %5106 = vst [vmem:[%s5699_s24 + $0xd0] sm:$0xff] %v4928_v50   ;;  %v2232_v53 = vpop.f32.mrf.mxu2  ;;  %v3106_v54 = vpop.f32.mrf.mxu3 }
 0x29c   : > { %v2390_v56 = vadd.f32 %v2232_v53, %v1455_v52  ;;  %v970_v57 = vpop.f32.mrf.mxu0  ;;  %v1457_v58 = vpop.f32.mrf.mxu1 }
 0x29d   : > { %v1458_v2 = vadd.f32 %v1457_v58, %v970_v57 }
 0x29e   : > { %v3264_v0 = vadd.f32 %v3106_v54, %v2390_v56 }
 0x29f   : > { %3840 = vmatmul.msk.bf16.gmra.mxu0 %vm676_vm0, %v5432_v55  ;;  %3920 = vmatmul.msk.bf16.gmra.mxu1 %vm676_vm0, %v5069_v59 }
 0x2a0   : > { %v3364_v1 = vadd.f32 %v5992_v20, %v3264_v0  ;;  %4196 = vmatmul.msk.bf16.gmra.mxu2 %vm676_vm0, %v4539_v60  ;;  %4472 = vmatmul.msk.bf16.gmra.mxu3 %vm676_vm0, %v4593_v62  ;;  %v5568_v8 = vpop.eup %5567  ;;  %v5438_v62 = vld [vmem:[#allocation2 + $0x14c] sm:$0xff]  }
 0x2a2   : > { %5569 = vtanh.f32 %v3364_v1 }
 0x2a3   : > { %v2235_v3 = vpop.f32.mrf.mxu2  ;;  %v3109_v4 = vpop.f32.mrf.mxu3 }
 0x2a4   : > { %v972_v5 = vpop.f32.mrf.mxu0  ;;  %v1459_v6 = vpop.f32.mrf.mxu1  ;;  %v2391_v7 = vadd.f32 %v2235_v3, %v1458_v2  ;;  %v5072_v2 = vld [vmem:[#allocation2 + $0x138] sm:$0xff]   ;;  %v4542_v3 = vld [vmem:[#allocation2 + $0x160] sm:$0xff] }
 0x2a5   : > { %v1460_v61 = vadd.f32 %v1459_v6, %v972_v5 }
 0x2a6   : > { %v3265_v11 = vadd.f32 %v3109_v4, %v2391_v7  ;;  %v4596_v4 = vld [vmem:[#allocation2 + $0x174] sm:$0xff] }
 0x2a8   : > { %v5570_v9 = vpop.eup %5569  ;;  %v3365_v22 = vadd.f32 %v5992_v20, %v3265_v11 }
 0x2a9   : > { %v4933_v10 = vpack.c.bf16 %v5570_v9, %v5568_v8 }
 0x2aa   : > { %5571 = vtanh.f32 %v3365_v22 }
 0x2ab   : > { %5107 = vst [vmem:[%s5699_s24 + $0xd8] sm:$0xff] %v4933_v10   ;;  %v2237_v12 = vpop.f32.mrf.mxu2  ;;  %v3111_v13 = vpop.f32.mrf.mxu3 }
 0x2ac   : > { %v2392_v15 = vadd.f32 %v2237_v12, %v1460_v61  ;;  %v975_v16 = vpop.f32.mrf.mxu0  ;;  %v1462_v17 = vpop.f32.mrf.mxu1 }
 0x2ad   : > { %v1463_v25 = vadd.f32 %v1462_v17, %v975_v16 }
 0x2ae   : > { %v3266_v23 = vadd.f32 %v3111_v13, %v2392_v15 }
 0x2af   : > { %3841 = vmatmul.msk.bf16.gmra.mxu0 %vm676_vm0, %v5434_v14  ;;  %3921 = vmatmul.msk.bf16.gmra.mxu1 %vm676_vm0, %v5070_v18 }
 0x2b0   : > { %v3366_v24 = vadd.f32 %v5992_v20, %v3266_v23  ;;  %4197 = vmatmul.msk.bf16.gmra.mxu2 %vm676_vm0, %v4540_v19  ;;  %4473 = vmatmul.msk.bf16.gmra.mxu3 %vm676_vm0, %v4594_v21  ;;  %v5572_v31 = vpop.eup %5571  ;;  %v5440_v21 = vld [vmem:[#allocation2 + $0x154] sm:$0xff]  }
 0x2b2   : > { %5573 = vtanh.f32 %v3366_v24 }
 0x2b3   : > { %v2240_v26 = vpop.f32.mrf.mxu2  ;;  %v3114_v27 = vpop.f32.mrf.mxu3 }
 0x2b4   : > { %v977_v28 = vpop.f32.mrf.mxu0  ;;  %v1464_v29 = vpop.f32.mrf.mxu1  ;;  %v2393_v30 = vadd.f32 %v2240_v26, %v1463_v25  ;;  %v5073_v25 = vld [vmem:[#allocation2 + $0x140] sm:$0xff]   ;;  %v4543_v26 = vld [vmem:[#allocation2 + $0x168] sm:$0xff] }
 0x2b5   : > { %v1465_v35 = vadd.f32 %v1464_v29, %v977_v28 }
 0x2b6   : > { %v3267_v34 = vadd.f32 %v3114_v27, %v2393_v30  ;;  %v4597_v27 = vld [vmem:[#allocation2 + $0x17c] sm:$0xff] }
 0x2b8   : > { %v5574_v32 = vpop.eup %5573  ;;  %v3367_v45 = vadd.f32 %v5992_v20, %v3267_v34 }
 0x2b9   : > { %v4938_v33 = vpack.c.bf16 %v5574_v32, %v5572_v31 }
 0x2ba   : > { %5575 = vtanh.f32 %v3367_v45 }
 0x2bb   : > { %5108 = vst [vmem:[%s5699_s24 + $0xe0] sm:$0xff] %v4938_v33   ;;  %v2242_v36 = vpop.f32.mrf.mxu2  ;;  %v3116_v37 = vpop.f32.mrf.mxu3 }
 0x2bc   : > { %v2394_v39 = vadd.f32 %v2242_v36, %v1465_v35  ;;  %v980_v40 = vpop.f32.mrf.mxu0  ;;  %v1467_v41 = vpop.f32.mrf.mxu1 }
 0x2bd   : > { %v1468_v48 = vadd.f32 %v1467_v41, %v980_v40 }
 0x2be   : > { %v3268_v46 = vadd.f32 %v3116_v37, %v2394_v39 }
 0x2bf   : > { %3842 = vmatmul.msk.bf16.gmra.mxu0 %vm676_vm0, %v5436_v38  ;;  %3922 = vmatmul.msk.bf16.gmra.mxu1 %vm676_vm0, %v5071_v42 }
 0x2c0   : > { %v3368_v47 = vadd.f32 %v5992_v20, %v3268_v46  ;;  %4198 = vmatmul.msk.bf16.gmra.mxu2 %vm676_vm0, %v4541_v43  ;;  %4474 = vmatmul.msk.bf16.gmra.mxu3 %vm676_vm0, %v4595_v44  ;;  %v5576_v54 = vpop.eup %5575  ;;  %v5442_v44 = vld [vmem:[#allocation2 + $0x15c] sm:$0xff]  }
 0x2c2   : > { %5577 = vtanh.f32 %v3368_v47 }
 0x2c3   : > { %v2245_v49 = vpop.f32.mrf.mxu2  ;;  %v3119_v50 = vpop.f32.mrf.mxu3 }
 0x2c4   : > { %v982_v51 = vpop.f32.mrf.mxu0  ;;  %v1469_v52 = vpop.f32.mrf.mxu1  ;;  %v2395_v53 = vadd.f32 %v2245_v49, %v1468_v48  ;;  %v5074_v48 = vld [vmem:[#allocation2 + $0x148] sm:$0xff]   ;;  %v4544_v49 = vld [vmem:[#allocation2 + $0x170] sm:$0xff] }
 0x2c5   : > { %v1470_v58 = vadd.f32 %v1469_v52, %v982_v51 }
 0x2c6   : > { %v3269_v57 = vadd.f32 %v3119_v50, %v2395_v53  ;;  %v4598_v50 = vld [vmem:[#allocation2 + $0x184] sm:$0xff] }
 0x2c8   : > { %v5578_v55 = vpop.eup %5577  ;;  %v3369_v5 = vadd.f32 %v5992_v20, %v3269_v57 }
 0x2c9   : > { %v4943_v56 = vpack.c.bf16 %v5578_v55, %v5576_v54 }
 0x2ca   : > { %5579 = vtanh.f32 %v3369_v5 }
 0x2cb   : > { %5109 = vst [vmem:[%s5699_s24 + $0xe8] sm:$0xff] %v4943_v56   ;;  %v2247_v59 = vpop.f32.mrf.mxu2  ;;  %v3121_v60 = vpop.f32.mrf.mxu3 }
 0x2cc   : > { %v2396_v63 = vadd.f32 %v2247_v59, %v1470_v58  ;;  %v985_v0 = vpop.f32.mrf.mxu0  ;;  %v1472_v1 = vpop.f32.mrf.mxu1 }
 0x2cd   : > { %v1473_v8 = vadd.f32 %v1472_v1, %v985_v0 }
 0x2ce   : > { %v3270_v6 = vadd.f32 %v3121_v60, %v2396_v63 }
 0x2cf   : > { %3843 = vmatmul.msk.bf16.gmra.mxu0 %vm676_vm0, %v5438_v62  ;;  %3923 = vmatmul.msk.bf16.gmra.mxu1 %vm676_vm0, %v5072_v2 }
 0x2d0   : > { %v3370_v7 = vadd.f32 %v5992_v20, %v3270_v6  ;;  %4199 = vmatmul.msk.bf16.gmra.mxu2 %vm676_vm0, %v4542_v3  ;;  %4475 = vmatmul.msk.bf16.gmra.mxu3 %vm676_vm0, %v4596_v4  ;;  %v5580_v13 = vpop.eup %5579  ;;  %v5444_v4 = vld [vmem:[#allocation2 + $0x164] sm:$0xff]  }
 0x2d2   : > { %5581 = vtanh.f32 %v3370_v7 }
 0x2d3   : > { %v2250_v9 = vpop.f32.mrf.mxu2  ;;  %v3124_v10 = vpop.f32.mrf.mxu3 }
 0x2d4   : > { %v987_v11 = vpop.f32.mrf.mxu0  ;;  %v1474_v61 = vpop.f32.mrf.mxu1  ;;  %v2397_v12 = vadd.f32 %v2250_v9, %v1473_v8  ;;  %v5075_v8 = vld [vmem:[#allocation2 + $0x150] sm:$0xff]   ;;  %v4545_v9 = vld [vmem:[#allocation2 + $0x178] sm:$0xff] }
 0x2d5   : > { %v1475_v17 = vadd.f32 %v1474_v61, %v987_v11 }
 0x2d6   : > { %v3271_v16 = vadd.f32 %v3124_v10, %v2397_v12  ;;  %v4599_v10 = vld [vmem:[#allocation2 + $0x18c] sm:$0xff] }
 0x2d8   : > { %v5582_v14 = vpop.eup %5581  ;;  %v3371_v28 = vadd.f32 %v5992_v20, %v3271_v16 }
 0x2d9   : > { %v4948_v15 = vpack.c.bf16 %v5582_v14, %v5580_v13 }
 0x2da   : > { %5583 = vtanh.f32 %v3371_v28 }
 0x2db   : > { %5110 = vst [vmem:[%s5699_s24 + $0xf0] sm:$0xff] %v4948_v15   ;;  %v2252_v18 = vpop.f32.mrf.mxu2  ;;  %v3126_v19 = vpop.f32.mrf.mxu3 }
 0x2dc   : > { %v2398_v22 = vadd.f32 %v2252_v18, %v1475_v17  ;;  %v990_v23 = vpop.f32.mrf.mxu0  ;;  %v1477_v24 = vpop.f32.mrf.mxu1 }
 0x2dd   : > { %v1478_v31 = vadd.f32 %v1477_v24, %v990_v23 }
 0x2de   : > { %v3272_v29 = vadd.f32 %v3126_v19, %v2398_v22 }
 0x2df   : > { %3844 = vmatmul.msk.bf16.gmra.mxu0 %vm676_vm0, %v5440_v21  ;;  %3924 = vmatmul.msk.bf16.gmra.mxu1 %vm676_vm0, %v5073_v25 }
 0x2e0   : > { %v3372_v30 = vadd.f32 %v5992_v20, %v3272_v29  ;;  %4200 = vmatmul.msk.bf16.gmra.mxu2 %vm676_vm0, %v4543_v26  ;;  %4476 = vmatmul.msk.bf16.gmra.mxu3 %vm676_vm0, %v4597_v27  ;;  %v5584_v37 = vpop.eup %5583  ;;  %v5446_v27 = vld [vmem:[#allocation2 + $0x16c] sm:$0xff]  }
 0x2e2   : > { %5585 = vtanh.f32 %v3372_v30 }
 0x2e3   : > { %v2255_v32 = vpop.f32.mrf.mxu2  ;;  %v3129_v33 = vpop.f32.mrf.mxu3 }
 0x2e4   : > { %v992_v34 = vpop.f32.mrf.mxu0  ;;  %v1479_v35 = vpop.f32.mrf.mxu1  ;;  %v2399_v36 = vadd.f32 %v2255_v32, %v1478_v31  ;;  %v5076_v31 = vld [vmem:[#allocation2 + $0x158] sm:$0xff]   ;;  %v4546_v32 = vld [vmem:[#allocation2 + $0x180] sm:$0xff] }
 0x2e5   : > { %v1480_v41 = vadd.f32 %v1479_v35, %v992_v34 }
 0x2e6   : > { %v3273_v40 = vadd.f32 %v3129_v33, %v2399_v36  ;;  %v4600_v33 = vld [vmem:[#allocation2 + $0x194] sm:$0xff]  ;;  %v6119_v36 = vld [vmem:[%s6185_s2] ss:$0 sm:$0xff] }
 0x2e8   : > { %v5586_v38 = vpop.eup %5585  ;;  %v3373_v51 = vadd.f32 %v5992_v20, %v3273_v40 }
 0x2e9   : > { %v4953_v39 = vpack.c.bf16 %v5586_v38, %v5584_v37 }
 0x2ea   : > { %5587 = vtanh.f32 %v3373_v51 }
 0x2eb   : > { %5111 = vst [vmem:[%s5699_s24 + $0xf8] sm:$0xff] %v4953_v39   ;;  %v2257_v42 = vpop.f32.mrf.mxu2  ;;  %v3131_v43 = vpop.f32.mrf.mxu3 }
 0x2ec   : > { %v2400_v45 = vadd.f32 %v2257_v42, %v1480_v41  ;;  %v995_v46 = vpop.f32.mrf.mxu0  ;;  %v1482_v47 = vpop.f32.mrf.mxu1 }
 0x2ed   : > { %v1483_v54 = vadd.f32 %v1482_v47, %v995_v46 }
 0x2ee   : > { %v3274_v52 = vadd.f32 %v3131_v43, %v2400_v45 }
 0x2ef   : > { %3845 = vmatmul.msk.bf16.gmra.mxu0 %vm676_vm0, %v5442_v44  ;;  %3925 = vmatmul.msk.bf16.gmra.mxu1 %vm676_vm0, %v5074_v48 }
 0x2f0   : > { %v3374_v53 = vadd.f32 %v5992_v20, %v3274_v52  ;;  %4201 = vmatmul.msk.bf16.gmra.mxu2 %vm676_vm0, %v4544_v49  ;;  %4477 = vmatmul.msk.bf16.gmra.mxu3 %vm676_vm0, %v4598_v50  ;;  %v5588_v60 = vpop.eup %5587  ;;  %v5448_v50 = vld [vmem:[#allocation2 + $0x174] sm:$0xff]  }
 0x2f2   : > { %5589 = vtanh.f32 %v3374_v53 }
 0x2f3   : > { %v2260_v55 = vpop.f32.mrf.mxu2  ;;  %v3134_v56 = vpop.f32.mrf.mxu3 }
 0x2f4   : > { %v997_v57 = vpop.f32.mrf.mxu0  ;;  %v1484_v58 = vpop.f32.mrf.mxu1  ;;  %v2401_v59 = vadd.f32 %v2260_v55, %v1483_v54  ;;  %v5077_v54 = vld [vmem:[#allocation2 + $0x160] sm:$0xff]   ;;  %v4547_v55 = vld [vmem:[#allocation2 + $0x188] sm:$0xff] }
 0x2f5   : > { %v1485_v1 = vadd.f32 %v1484_v58, %v997_v57 }
 0x2f6   : > { %v3275_v0 = vadd.f32 %v3134_v56, %v2401_v59  ;;  %v4601_v56 = vld [vmem:[#allocation2 + $0x19c] sm:$0xff] }
 0x2f8   : > { %v5590_v62 = vpop.eup %5589  ;;  %v3375_v11 = vadd.f32 %v5992_v20, %v3275_v0 }
 0x2f9   : > { %v4958_v63 = vpack.c.bf16 %v5590_v62, %v5588_v60 }
 0x2fa   : > { %5591 = vtanh.f32 %v3375_v11 }
 0x2fb   : > { %5112 = vst [vmem:[%s5699_s24 + $0x100] sm:$0xff] %v4958_v63   ;;  %v2262_v2 = vpop.f32.mrf.mxu2  ;;  %v3136_v3 = vpop.f32.mrf.mxu3 }
 0x2fc   : > { %v2402_v5 = vadd.f32 %v2262_v2, %v1485_v1  ;;  %v1000_v6 = vpop.f32.mrf.mxu0  ;;  %v1487_v7 = vpop.f32.mrf.mxu1 }
 0x2fd   : > { %v1488_v13 = vadd.f32 %v1487_v7, %v1000_v6 }
 0x2fe   : > { %v3276_v61 = vadd.f32 %v3136_v3, %v2402_v5 }
 0x2ff   : > { %3846 = vmatmul.msk.bf16.gmra.mxu0 %vm676_vm0, %v5444_v4  ;;  %3926 = vmatmul.msk.bf16.gmra.mxu1 %vm676_vm0, %v5075_v8 }
 0x300   : > { %v3376_v12 = vadd.f32 %v5992_v20, %v3276_v61  ;;  %4202 = vmatmul.msk.bf16.gmra.mxu2 %vm676_vm0, %v4545_v9  ;;  %4478 = vmatmul.msk.bf16.gmra.mxu3 %vm676_vm0, %v4599_v10  ;;  %v5592_v19 = vpop.eup %5591  ;;  %v5449_v10 = vld [vmem:[#allocation2 + $0x17c] sm:$0xff] }
 0x302   : > { %5593 = vtanh.f32 %v3376_v12 }
 0x303   : > { %v2265_v14 = vpop.f32.mrf.mxu2  ;;  %v3139_v15 = vpop.f32.mrf.mxu3 }
 0x304   : > { %v1002_v16 = vpop.f32.mrf.mxu0  ;;  %v1489_v17 = vpop.f32.mrf.mxu1  ;;  %v2403_v18 = vadd.f32 %v2265_v14, %v1488_v13  ;;  %v5078_v13 = vld [vmem:[#allocation2 + $0x168] sm:$0xff]   ;;  %v4548_v14 = vld [vmem:[#allocation2 + $0x190] sm:$0xff] }
 0x305   : > { %v1490_v24 = vadd.f32 %v1489_v17, %v1002_v16 }
 0x306   : > { %v3277_v23 = vadd.f32 %v3139_v15, %v2403_v18  ;;  %v4602_v15 = vld [vmem:[#allocation2 + $0x1a4] sm:$0xff] }
 0x308   : > { %v5594_v21 = vpop.eup %5593  ;;  %v3377_v34 = vadd.f32 %v5992_v20, %v3277_v23 }
 0x309   : > { %v4963_v22 = vpack.c.bf16 %v5594_v21, %v5592_v19 }
 0x30a   : > { %5595 = vtanh.f32 %v3377_v34 }
 0x30b   : > { %5113 = vst [vmem:[%s5699_s24 + $0x108] sm:$0xff] %v4963_v22   ;;  %v2267_v25 = vpop.f32.mrf.mxu2  ;;  %v3141_v26 = vpop.f32.mrf.mxu3 }
 0x30c   : > { %v2404_v28 = vadd.f32 %v2267_v25, %v1490_v24  ;;  %v1005_v29 = vpop.f32.mrf.mxu0  ;;  %v1492_v30 = vpop.f32.mrf.mxu1 }
 0x30d   : > { %v1493_v38 = vadd.f32 %v1492_v30, %v1005_v29 }
 0x30e   : > { %v3278_v35 = vadd.f32 %v3141_v26, %v2404_v28 }
 0x30f   : > { %3847 = vmatmul.msk.bf16.gmra.mxu0 %vm676_vm0, %v5446_v27  ;;  %3927 = vmatmul.msk.bf16.gmra.mxu1 %vm676_vm0, %v5076_v31 }
 0x310   : > { %v3378_v37 = vadd.f32 %v6119_v36, %v3278_v35  ;;  %4203 = vmatmul.msk.bf16.gmra.mxu2 %vm676_vm0, %v4546_v32  ;;  %4479 = vmatmul.msk.bf16.gmra.mxu3 %vm676_vm0, %v4600_v33  ;;  %v5596_v43 = vpop.eup %5595  ;;  %v4495_v33 = vld [vmem:[#allocation2 + $0x184] sm:$0xff] }
 0x312   : > { %5597 = vtanh.f32 %v3378_v37 }
 0x313   : > { %v2270_v20 = vpop.f32.mrf.mxu2  ;;  %v3144_v39 = vpop.f32.mrf.mxu3 }
 0x314   : > { %v1007_v40 = vpop.f32.mrf.mxu0  ;;  %v1494_v41 = vpop.f32.mrf.mxu1  ;;  %v2405_v42 = vadd.f32 %v2270_v20, %v1493_v38  ;;  %v5079_v38 = vld [vmem:[#allocation2 + $0x170] sm:$0xff]   ;;  %v4549_v20 = vld [vmem:[#allocation2 + $0x198] sm:$0xff] }
 0x315   : > { %v1495_v47 = vadd.f32 %v1494_v41, %v1007_v40 }
 0x316   : > { %v3279_v46 = vadd.f32 %v3144_v39, %v2405_v42  ;;  %v4603_v39 = vld [vmem:[#allocation2 + $0x1ac] sm:$0xff] }
 0x318   : > { %v5598_v44 = vpop.eup %5597  ;;  %v3379_v57 = vadd.f32 %v6119_v36, %v3279_v46 }
 0x319   : > { %v4968_v45 = vpack.c.bf16 %v5598_v44, %v5596_v43 }
 0x31a   : > { %5599 = vtanh.f32 %v3379_v57 }
 0x31b   : > { %5114 = vst [vmem:[%s5699_s24 + $0x110] sm:$0xff] %v4968_v45   ;;  %v2272_v48 = vpop.f32.mrf.mxu2  ;;  %v3146_v49 = vpop.f32.mrf.mxu3 }
 0x31c   : > { %v2406_v51 = vadd.f32 %v2272_v48, %v1495_v47  ;;  %v1010_v52 = vpop.f32.mrf.mxu0  ;;  %v1497_v53 = vpop.f32.mrf.mxu1 }
 0x31d   : > { %v1498_v60 = vadd.f32 %v1497_v53, %v1010_v52 }
 0x31e   : > { %v3280_v58 = vadd.f32 %v3146_v49, %v2406_v51 }
 0x31f   : > { %3848 = vmatmul.msk.bf16.gmra.mxu0 %vm676_vm0, %v5448_v50  ;;  %3928 = vmatmul.msk.bf16.gmra.mxu1 %vm676_vm0, %v5077_v54 }
 0x320   : > { %v3380_v59 = vadd.f32 %v6119_v36, %v3280_v58  ;;  %4204 = vmatmul.msk.bf16.gmra.mxu2 %vm676_vm0, %v4547_v55  ;;  %4480 = vmatmul.msk.bf16.gmra.mxu3 %vm676_vm0, %v4601_v56  ;;  %v5600_v3 = vpop.eup %5599  ;;  %v4496_v56 = vld [vmem:[#allocation2 + $0x18c] sm:$0xff] }
 0x322   : > { %5601 = vtanh.f32 %v3380_v59 }
 0x323   : > { %v2275_v62 = vpop.f32.mrf.mxu2  ;;  %v3149_v63 = vpop.f32.mrf.mxu3 }
 0x324   : > { %v1012_v0 = vpop.f32.mrf.mxu0  ;;  %v1499_v1 = vpop.f32.mrf.mxu1  ;;  %v2407_v2 = vadd.f32 %v2275_v62, %v1498_v60  ;;  %v5080_v60 = vld [vmem:[#allocation2 + $0x178] sm:$0xff]   ;;  %v4550_v62 = vld [vmem:[#allocation2 + $0x1a0] sm:$0xff] }
 0x325   : > { %v1500_v7 = vadd.f32 %v1499_v1, %v1012_v0 }
 0x326   : > { %v3281_v6 = vadd.f32 %v3149_v63, %v2407_v2  ;;  %v4604_v63 = vld [vmem:[#allocation2 + $0x1b4] sm:$0xff] }
 0x328   : > { %v5602_v4 = vpop.eup %5601  ;;  %v3381_v16 = vadd.f32 %v6119_v36, %v3281_v6 }
 0x329   : > { %v4973_v5 = vpack.c.bf16 %v5602_v4, %v5600_v3 }
 0x32a   : > { %5603 = vtanh.f32 %v3381_v16 }
 0x32b   : > { %5115 = vst [vmem:[%s5699_s24 + $0x118] sm:$0xff] %v4973_v5   ;;  %v2277_v8 = vpop.f32.mrf.mxu2  ;;  %v3151_v9 = vpop.f32.mrf.mxu3 }
 0x32c   : > { %v2408_v11 = vadd.f32 %v2277_v8, %v1500_v7  ;;  %v1015_v61 = vpop.f32.mrf.mxu0  ;;  %v1502_v12 = vpop.f32.mrf.mxu1 }
 0x32d   : > { %v1503_v19 = vadd.f32 %v1502_v12, %v1015_v61 }
 0x32e   : > { %v3282_v17 = vadd.f32 %v3151_v9, %v2408_v11 }
 0x32f   : > { %3849 = vmatmul.msk.bf16.gmra.mxu0 %vm676_vm0, %v5449_v10  ;;  %3929 = vmatmul.msk.bf16.gmra.mxu1 %vm676_vm0, %v5078_v13 }
 0x330   : > { %v3382_v18 = vadd.f32 %v6119_v36, %v3282_v17  ;;  %4205 = vmatmul.msk.bf16.gmra.mxu2 %vm676_vm0, %v4548_v14  ;;  %4481 = vmatmul.msk.bf16.gmra.mxu3 %vm676_vm0, %v4602_v15  ;;  %v5604_v26 = vpop.eup %5603 }
 0x332   : > { %5605 = vtanh.f32 %v3382_v18 }
 0x333   : > { %v2280_v21 = vpop.f32.mrf.mxu2  ;;  %v3154_v22 = vpop.f32.mrf.mxu3 }
 0x334   : > { %v1017_v23 = vpop.f32.mrf.mxu0  ;;  %v1504_v24 = vpop.f32.mrf.mxu1  ;;  %v2409_v25 = vadd.f32 %v2280_v21, %v1503_v19 }
 0x335   : > { %v1505_v30 = vadd.f32 %v1504_v24, %v1017_v23 }
 0x336   : > { %v3283_v29 = vadd.f32 %v3154_v22, %v2409_v25 }
 0x338   : > { %v5606_v27 = vpop.eup %5605  ;;  %v3383_v40 = vadd.f32 %v6119_v36, %v3283_v29 }
 0x339   : > { %v4978_v28 = vpack.c.bf16 %v5606_v27, %v5604_v26 }
 0x33a   : > { %5607 = vtanh.f32 %v3383_v40 }
 0x33b   : > { %5116 = vst [vmem:[%s5699_s24 + $0x120] sm:$0xff] %v4978_v28   ;;  %v2282_v31 = vpop.f32.mrf.mxu2  ;;  %v3156_v32 = vpop.f32.mrf.mxu3 }
 0x33c   : > { %v2410_v34 = vadd.f32 %v2282_v31, %v1505_v30  ;;  %v1020_v35 = vpop.f32.mrf.mxu0  ;;  %v1507_v37 = vpop.f32.mrf.mxu1 }
 0x33d   : > { %v1508_v43 = vadd.f32 %v1507_v37, %v1020_v35 }
 0x33e   : > { %v3284_v41 = vadd.f32 %v3156_v32, %v2410_v34 }
 0x33f   : > { %3850 = vmatmul.msk.bf16.gmra.mxu0 %vm676_vm0, %v4495_v33  ;;  %3930 = vmatmul.msk.bf16.gmra.mxu1 %vm676_vm0, %v5079_v38 }
 0x340   : > { %v3384_v42 = vadd.f32 %v6119_v36, %v3284_v41  ;;  %4206 = vmatmul.msk.bf16.gmra.mxu2 %vm676_vm0, %v4549_v20  ;;  %4482 = vmatmul.msk.bf16.gmra.mxu3 %vm676_vm0, %v4603_v39  ;;  %v5608_v49 = vpop.eup %5607 }
 0x342   : > { %5609 = vtanh.f32 %v3384_v42 }
 0x343   : > { %v2285_v44 = vpop.f32.mrf.mxu2  ;;  %v3159_v45 = vpop.f32.mrf.mxu3 }
 0x344   : > { %v1022_v46 = vpop.f32.mrf.mxu0  ;;  %v1509_v47 = vpop.f32.mrf.mxu1  ;;  %v2411_v48 = vadd.f32 %v2285_v44, %v1508_v43 }
 0x345   : > { %v1510_v53 = vadd.f32 %v1509_v47, %v1022_v46 }
 0x346   : > { %v3285_v52 = vadd.f32 %v3159_v45, %v2411_v48 }
 0x348   : > { %v5610_v50 = vpop.eup %5609  ;;  %v3385_v0 = vadd.f32 %v6119_v36, %v3285_v52 }
 0x349   : > { %v4983_v51 = vpack.c.bf16 %v5610_v50, %v5608_v49 }
 0x34a   : > { %5611 = vtanh.f32 %v3385_v0 }
 0x34b   : > { %5117 = vst [vmem:[%s5699_s24 + $0x128] sm:$0xff] %v4983_v51   ;;  %v2287_v54 = vpop.f32.mrf.mxu2  ;;  %v3161_v55 = vpop.f32.mrf.mxu3 }
 0x34c   : > { %v2412_v57 = vadd.f32 %v2287_v54, %v1510_v53  ;;  %v1025_v58 = vpop.f32.mrf.mxu0  ;;  %v1512_v59 = vpop.f32.mrf.mxu1 }
 0x34d   : > { %v1513_v3 = vadd.f32 %v1512_v59, %v1025_v58 }
 0x34e   : > { %v3286_v1 = vadd.f32 %v3161_v55, %v2412_v57 }
 0x34f   : > { %3851 = vmatmul.msk.bf16.gmra.mxu0 %vm676_vm0, %v4496_v56  ;;  %3931 = vmatmul.msk.bf16.gmra.mxu1 %vm676_vm0, %v5080_v60 }
 0x350   : > { %v3386_v2 = vadd.f32 %v6119_v36, %v3286_v1  ;;  %4207 = vmatmul.msk.bf16.gmra.mxu2 %vm676_vm0, %v4550_v62  ;;  %4483 = vmatmul.msk.bf16.gmra.mxu3 %vm676_vm0, %v4604_v63  ;;  %v5612_v9 = vpop.eup %5611 }
 0x352   : > { %5613 = vtanh.f32 %v3386_v2 }
 0x353   : > { %v2290_v4 = vpop.f32.mrf.mxu2  ;;  %v3164_v5 = vpop.f32.mrf.mxu3 }
 0x354   : > { %v1027_v6 = vpop.f32.mrf.mxu0  ;;  %v1514_v7 = vpop.f32.mrf.mxu1  ;;  %v2413_v8 = vadd.f32 %v2290_v4, %v1513_v3 }
 0x355   : > { %v1515_v12 = vadd.f32 %v1514_v7, %v1027_v6 }
 0x356   : > { %v3287_v61 = vadd.f32 %v3164_v5, %v2413_v8 }
 0x358   : > { %v5614_v10 = vpop.eup %5613  ;;  %v3387_v18 = vadd.f32 %v6119_v36, %v3287_v61 }
 0x359   : > { %v4988_v11 = vpack.c.bf16 %v5614_v10, %v5612_v9 }
 0x35a   : > { %5615 = vtanh.f32 %v3387_v18 }
 0x35b   : > { %5118 = vst [vmem:[%s5699_s24 + $0x130] sm:$0xff] %v4988_v11   ;;  %v2292_v13 = vpop.f32.mrf.mxu2  ;;  %v3166_v14 = vpop.f32.mrf.mxu3 }
 0x35c   : > { %v2414_v15 = vadd.f32 %v2292_v13, %v1515_v12  ;;  %v1030_v16 = vpop.f32.mrf.mxu0  ;;  %v1517_v17 = vpop.f32.mrf.mxu1 }
 0x35d   : > { %v1518_v22 = vadd.f32 %v1517_v17, %v1030_v16 }
 0x35e   : > { %v3288_v19 = vadd.f32 %v3166_v14, %v2414_v15 }
 0x360   : > { %v3388_v21 = vadd.f32 %v6119_v36, %v3288_v19  ;;  %v5616_v28 = vpop.eup %5615 }
 0x362   : > { %5617 = vtanh.f32 %v3388_v21 }
 0x363   : > { %v2295_v23 = vpop.f32.mrf.mxu2  ;;  %v3169_v24 = vpop.f32.mrf.mxu3 }
 0x364   : > { %v1032_v25 = vpop.f32.mrf.mxu0  ;;  %v1519_v26 = vpop.f32.mrf.mxu1  ;;  %v2415_v27 = vadd.f32 %v2295_v23, %v1518_v22 }
 0x365   : > { %v1520_v32 = vadd.f32 %v1519_v26, %v1032_v25 }
 0x366   : > { %v3289_v31 = vadd.f32 %v3169_v24, %v2415_v27 }
 0x368   : > { %v5618_v29 = vpop.eup %5617  ;;  %v3389_v20 = vadd.f32 %v6119_v36, %v3289_v31 }
 0x369   : > { %v4993_v30 = vpack.c.bf16 %v5618_v29, %v5616_v28 }
 0x36a   : > { %5619 = vtanh.f32 %v3389_v20 }
 0x36b   : > { %5119 = vst [vmem:[%s5699_s24 + $0x138] sm:$0xff] %v4993_v30   ;;  %v2297_v33 = vpop.f32.mrf.mxu2  ;;  %v3171_v34 = vpop.f32.mrf.mxu3 }
 0x36c   : > { %v2416_v35 = vadd.f32 %v2297_v33, %v1520_v32  ;;  %v1035_v37 = vpop.f32.mrf.mxu0  ;;  %v1522_v38 = vpop.f32.mrf.mxu1 }
 0x36d   : > { %v1523_v41 = vadd.f32 %v1522_v38, %v1035_v37 }
 0x36e   : > { %v3290_v39 = vadd.f32 %v3171_v34, %v2416_v35 }
 0x370   : > { %v3390_v40 = vadd.f32 %v6119_v36, %v3290_v39  ;;  %v5620_v47 = vpop.eup %5619 }
 0x372   : > { %5621 = vtanh.f32 %v3390_v40 }
 0x373   : > { %v2300_v42 = vpop.f32.mrf.mxu2  ;;  %v3174_v43 = vpop.f32.mrf.mxu3 }
 0x374   : > { %v1037_v44 = vpop.f32.mrf.mxu0  ;;  %v1524_v45 = vpop.f32.mrf.mxu1  ;;  %v2417_v46 = vadd.f32 %v2300_v42, %v1523_v41 }
 0x375   : > { %v1525_v51 = vadd.f32 %v1524_v45, %v1037_v44 }
 0x376   : > { %v3291_v50 = vadd.f32 %v3174_v43, %v2417_v46 }
 0x378   : > { %v5622_v48 = vpop.eup %5621  ;;  %v3391_v57 = vadd.f32 %v6119_v36, %v3291_v50 }
 0x379   : > { %v4998_v49 = vpack.c.bf16 %v5622_v48, %v5620_v47 }
 0x37a   : > { %5623 = vtanh.f32 %v3391_v57 }
 0x37b   : > { %5120 = vst [vmem:[%s5699_s24 + $0x140] sm:$0xff] %v4998_v49   ;;  %v2302_v52 = vpop.f32.mrf.mxu2  ;;  %v3176_v53 = vpop.f32.mrf.mxu3 }
 0x37c   : > { %v2418_v54 = vadd.f32 %v2302_v52, %v1525_v51  ;;  %v1040_v55 = vpop.f32.mrf.mxu0  ;;  %v1527_v56 = vpop.f32.mrf.mxu1 }
 0x37d   : > { %v1528_v60 = vadd.f32 %v1527_v56, %v1040_v55 }
 0x37e   : > { %v3292_v58 = vadd.f32 %v3176_v53, %v2418_v54 }
 0x380   : > { %v3392_v59 = vadd.f32 %v6119_v36, %v3292_v58  ;;  %v5624_v3 = vpop.eup %5623 }
 0x382   : > { %5625 = vtanh.f32 %v3392_v59 }
 0x383   : > { %v2305_v62 = vpop.f32.mrf.mxu2  ;;  %v3179_v63 = vpop.f32.mrf.mxu3 }
 0x384   : > { %v1042_v0 = vpop.f32.mrf.mxu0  ;;  %v1529_v1 = vpop.f32.mrf.mxu1  ;;  %v2419_v2 = vadd.f32 %v2305_v62, %v1528_v60 }
 0x385   : > { %v1530_v7 = vadd.f32 %v1529_v1, %v1042_v0 }
 0x386   : > { %v3293_v6 = vadd.f32 %v3179_v63, %v2419_v2 }
 0x388   : > { %v5626_v4 = vpop.eup %5625  ;;  %v3393_v12 = vadd.f32 %v6119_v36, %v3293_v6 }
 0x389   : > { %v5003_v5 = vpack.c.bf16 %v5626_v4, %v5624_v3 }
 0x38a   : > { %5627 = vtanh.f32 %v3393_v12 }
 0x38b   : > { %5121 = vst [vmem:[%s5699_s24 + $0x148] sm:$0xff] %v5003_v5   ;;  %v2307_v8 = vpop.f32.mrf.mxu2  ;;  %v3181_v9 = vpop.f32.mrf.mxu3 }
 0x38c   : > { %v2420_v10 = vadd.f32 %v2307_v8, %v1530_v7  ;;  %v1045_v11 = vpop.f32.mrf.mxu0  ;;  %v1532_v61 = vpop.f32.mrf.mxu1 }
 0x38d   : > { %v1533_v15 = vadd.f32 %v1532_v61, %v1045_v11 }
 0x38e   : > { %v3294_v13 = vadd.f32 %v3181_v9, %v2420_v10 }
 0x390   : > { %v3394_v14 = vadd.f32 %v6119_v36, %v3294_v13  ;;  %v5628_v22 = vpop.eup %5627 }
 0x392   : > { %5629 = vtanh.f32 %v3394_v14 }
 0x393   : > { %v2310_v16 = vpop.f32.mrf.mxu2  ;;  %v3184_v17 = vpop.f32.mrf.mxu3 }
 0x394   : > { %v1047_v18 = vpop.f32.mrf.mxu0  ;;  %v1534_v19 = vpop.f32.mrf.mxu1  ;;  %v2421_v21 = vadd.f32 %v2310_v16, %v1533_v15 }
 0x395   : > { %v1535_v26 = vadd.f32 %v1534_v19, %v1047_v18 }
 0x396   : > { %v3295_v25 = vadd.f32 %v3184_v17, %v2421_v21 }
 0x398   : > { %v5630_v23 = vpop.eup %5629  ;;  %v3395_v32 = vadd.f32 %v6119_v36, %v3295_v25 }
 0x399   : > { %v5008_v24 = vpack.c.bf16 %v5630_v23, %v5628_v22 }
 0x39a   : > { %5631 = vtanh.f32 %v3395_v32 }
 0x39b   : > { %5122 = vst [vmem:[%s5699_s24 + $0x150] sm:$0xff] %v5008_v24   ;;  %v2312_v27 = vpop.f32.mrf.mxu2  ;;  %v3186_v28 = vpop.f32.mrf.mxu3 }
 0x39c   : > { %v2422_v29 = vadd.f32 %v2312_v27, %v1535_v26  ;;  %v1050_v30 = vpop.f32.mrf.mxu0  ;;  %v1537_v31 = vpop.f32.mrf.mxu1 }
 0x39d   : > { %v1538_v35 = vadd.f32 %v1537_v31, %v1050_v30 }
 0x39e   : > { %v3296_v33 = vadd.f32 %v3186_v28, %v2422_v29 }
 0x3a0   : > { %v3396_v34 = vadd.f32 %v6119_v36, %v3296_v33  ;;  %v5632_v41 = vpop.eup %5631 }
 0x3a2   : > { %5633 = vtanh.f32 %v3396_v34 }
 0x3a3   : > { %v2315_v37 = vpop.f32.mrf.mxu2  ;;  %v3189_v38 = vpop.f32.mrf.mxu3 }
 0x3a4   : > { %v1052_v20 = vpop.f32.mrf.mxu0  ;;  %v1539_v39 = vpop.f32.mrf.mxu1  ;;  %v2423_v40 = vadd.f32 %v2315_v37, %v1538_v35 }
 0x3a5   : > { %v1540_v45 = vadd.f32 %v1539_v39, %v1052_v20 }
 0x3a6   : > { %v3297_v44 = vadd.f32 %v3189_v38, %v2423_v40 }
 0x3a8   : > { %v5634_v42 = vpop.eup %5633  ;;  %v3397_v51 = vadd.f32 %v6119_v36, %v3297_v44 }
 0x3a9   : > { %v5013_v43 = vpack.c.bf16 %v5634_v42, %v5632_v41 }
 0x3aa   : > { %5635 = vtanh.f32 %v3397_v51 }
 0x3ab   : > { %5123 = vst [vmem:[%s5699_s24 + $0x158] sm:$0xff] %v5013_v43   ;;  %v2317_v46 = vpop.f32.mrf.mxu2  ;;  %v3191_v47 = vpop.f32.mrf.mxu3 }
 0x3ac   : > { %v2424_v48 = vadd.f32 %v2317_v46, %v1540_v45  ;;  %v1055_v49 = vpop.f32.mrf.mxu0  ;;  %v1542_v50 = vpop.f32.mrf.mxu1 }
 0x3ad   : > { %v1543_v54 = vadd.f32 %v1542_v50, %v1055_v49 }
 0x3ae   : > { %v3298_v52 = vadd.f32 %v3191_v47, %v2424_v48 }
 0x3b0   : > { %v3398_v53 = vadd.f32 %v6119_v36, %v3298_v52  ;;  %v5636_v60 = vpop.eup %5635 }
 0x3b2   : > { %5637 = vtanh.f32 %v3398_v53 }
 0x3b3   : > { %v2320_v55 = vpop.f32.mrf.mxu2  ;;  %v3194_v56 = vpop.f32.mrf.mxu3 }
 0x3b4   : > { %v1057_v57 = vpop.f32.mrf.mxu0  ;;  %v1544_v58 = vpop.f32.mrf.mxu1  ;;  %v2425_v59 = vadd.f32 %v2320_v55, %v1543_v54 }
 0x3b5   : > { %v1545_v1 = vadd.f32 %v1544_v58, %v1057_v57 }
 0x3b6   : > { %v3299_v0 = vadd.f32 %v3194_v56, %v2425_v59 }
 0x3b8   : > { %v5638_v62 = vpop.eup %5637  ;;  %v3399_v7 = vadd.f32 %v6119_v36, %v3299_v0 }
 0x3b9   : > { %v5018_v63 = vpack.c.bf16 %v5638_v62, %v5636_v60 }
 0x3ba   : > { %5639 = vtanh.f32 %v3399_v7 }
 0x3bb   : > { %5124 = vst [vmem:[%s5699_s24 + $0x160] sm:$0xff] %v5018_v63   ;;  %v2322_v2 = vpop.f32.mrf.mxu2  ;;  %v3196_v3 = vpop.f32.mrf.mxu3 }
 0x3bc   : > { %v2426_v4 = vadd.f32 %v2322_v2, %v1545_v1  ;;  %v1060_v5 = vpop.f32.mrf.mxu0  ;;  %v1547_v6 = vpop.f32.mrf.mxu1 }
 0x3bd   : > { %v1548_v10 = vadd.f32 %v1547_v6, %v1060_v5 }
 0x3be   : > { %v3300_v8 = vadd.f32 %v3196_v3, %v2426_v4 }
 0x3c0   : > { %v3400_v9 = vadd.f32 %v6119_v36, %v3300_v8  ;;  %v5640_v15 = vpop.eup %5639 }
 0x3c2   : > { %5641 = vtanh.f32 %v3400_v9 }
 0x3c3   : > { %v2325_v11 = vpop.f32.mrf.mxu2  ;;  %v3199_v61 = vpop.f32.mrf.mxu3 }
 0x3c4   : > { %v1062_v12 = vpop.f32.mrf.mxu0  ;;  %v1549_v13 = vpop.f32.mrf.mxu1  ;;  %v2427_v14 = vadd.f32 %v2325_v11, %v1548_v10 }
 0x3c5   : > { %v1550_v19 = vadd.f32 %v1549_v13, %v1062_v12 }
 0x3c6   : > { %v3301_v18 = vadd.f32 %v3199_v61, %v2427_v14 }
 0x3c8   : > { %v5642_v16 = vpop.eup %5641  ;;  %v3401_v24 = vadd.f32 %v6119_v36, %v3301_v18 }
 0x3c9   : > { %v5023_v17 = vpack.c.bf16 %v5642_v16, %v5640_v15 }
 0x3ca   : > { %5643 = vtanh.f32 %v3401_v24 }
 0x3cb   : > { %5125 = vst [vmem:[%s5699_s24 + $0x168] sm:$0xff] %v5023_v17   ;;  %v2327_v21 = vpop.f32.mrf.mxu2  ;;  %v3201_v22 = vpop.f32.mrf.mxu3 }
 0x3cc   : > { %v2428_v23 = vadd.f32 %v2327_v21, %v1550_v19  ;;  %v1065_v25 = vpop.f32.mrf.mxu0  ;;  %v1552_v26 = vpop.f32.mrf.mxu1 }
 0x3cd   : > { %v1553_v29 = vadd.f32 %v1552_v26, %v1065_v25 }
 0x3ce   : > { %v3302_v27 = vadd.f32 %v3201_v22, %v2428_v23 }
 0x3d0   : > { %v3402_v28 = vadd.f32 %v6119_v36, %v3302_v27  ;;  %v5644_v33 = vpop.eup %5643 }
 0x3d2   : > { %5645 = vtanh.f32 %v3402_v28 }
 0x3d3   : > { %v2330_v30 = vpop.f32.mrf.mxu2  ;;  %v3204_v31 = vpop.f32.mrf.mxu3 }
 0x3d4   : > { %v2429_v32 = vadd.f32 %v2330_v30, %v1553_v29  ;;  %v1067_v34 = vpop.f32.mrf.mxu0  ;;  %v1554_v35 = vpop.f32.mrf.mxu1 }
 0x3d5   : > { %v1555_v39 = vadd.f32 %v1554_v35, %v1067_v34 }
 0x3d6   : > { %v3303_v20 = vadd.f32 %v3204_v31, %v2429_v32 }
 0x3d8   : > { %v5646_v37 = vpop.eup %5645  ;;  %v3403_v42 = vadd.f32 %v6119_v36, %v3303_v20 }
 0x3d9   : > { %v5028_v38 = vpack.c.bf16 %v5646_v37, %v5644_v33 }
 0x3da   : > { %5647 = vtanh.f32 %v3403_v42 }
 0x3db   : > { %5126 = vst [vmem:[%s5699_s24 + $0x170] sm:$0xff] %v5028_v38   ;;  %v2332_v40 = vpop.f32.mrf.mxu2  ;;  %v3206_v43 = vpop.f32.mrf.mxu3 }
 0x3dc   : > { %v2430_v41 = vadd.f32 %v2332_v40, %v1555_v39 }
 0x3de   : > { %v3304_v44 = vadd.f32 %v3206_v43, %v2430_v41 }
 0x3e0   : > { %v3404_v45 = vadd.f32 %v6119_v36, %v3304_v44  ;;  %v5648_v46 = vpop.eup %5647 }
 0x3e2   : > { %5649 = vtanh.f32 %v3404_v45 }
 0x3e8   : > { %v5650_v47 = vpop.eup %5649 }
 0x3e9   : > { %v5033_v48 = vpack.c.bf16 %v5650_v47, %v5648_v46 }
 0x3eb   : > { %5127 = vst [vmem:[%s5699_s24 + $0x178] sm:$0xff] %v5033_v48  }
 0x3ec PF: > { %s13_s12 = sadd.s32 1, %s5661_s12  }
 0x3ed   : > { %p10_p4 = scmp.ge.s32.totalorder %s13_s12, 6  }
 0x3ef   :  { %12 = sbr.rel (!%p10_p4) target bundleno = 1 (0x1), region = 91 }
 0x3f4   :  { %3715 = vsyncmov [#allocation3] }
 0x3f7   :  { %s3716_s29 = vpop.sfrf %3715 }
 0x3f8   :  { %p4486_p5 = scmp.ne.s32.totalorder %s3716_s29, 0 }
 0x3fa   :  { %3720 = shalt.err (%p4486_p5)  }

</bundles_post_ra>
